<compile_context>
chip_gen: v6e
topology: v6e:2x2x1
jax: 0.10.0
libtpu: 0.0.40
codegen_flags: <defaults>
</compile_context>

<pallas_src>
import functools

import jax
import jax.numpy as jnp
from jax.experimental import pallas as pl
from jax.experimental.pallas import tpu as pltpu


def _round_up(x, m):
    return ((x + m - 1) // m) * m


# ----------------------------------------------------------------------------
# Pallas kernel 1: per-relation feature transform  XW_all[r] = X @ W_all[r]
# (bf16 in, f32 MXU accumulate, bf16 out).  Hoists the X @ W work out of the
# O(R * N^2) aggregation loop.
# ----------------------------------------------------------------------------
def _feat_transform_kernel(x_ref, w_ref, o_ref):
    o_ref[...] = jnp.dot(
        x_ref[...], w_ref[...], preferred_element_type=jnp.float32
    ).astype(o_ref.dtype)


def feat_transform(x_bf16, w_all_bf16, *, tile_n):
    """x: [N, Fin] bf16; w_all: [Rp, Fin, Fout] bf16 -> [Rp, N, Fout] bf16."""
    Rp, Fin, Fout = w_all_bf16.shape
    N = x_bf16.shape[0]
    return pl.pallas_call(
        _feat_transform_kernel,
        out_shape=jax.ShapeDtypeStruct((Rp, N, Fout), jnp.bfloat16),
        grid_spec=pltpu.PrefetchScalarGridSpec(
            num_scalar_prefetch=0,
            grid=(N // tile_n, Rp),
            in_specs=[
                pl.BlockSpec((tile_n, Fin), lambda n, r: (n, 0)),      # X rows
                pl.BlockSpec((None, Fin, Fout), lambda n, r: (r, 0, 0)),  # W_all[r]
            ],
            out_specs=pl.BlockSpec((None, tile_n, Fout), lambda n, r: (r, n, 0)),
        ),
        compiler_params=pltpu.CompilerParams(
            dimension_semantics=("parallel", "arbitrary"),
            vmem_limit_bytes=32 * 1024 * 1024,
        ),
    )(x_bf16, w_all_bf16)


# ----------------------------------------------------------------------------
# Pallas kernel 2: relational aggregation.
#   grid = (dst_tiles, R, src_tiles); out block depends only on the dst-tile
#   axis, so it is a resident f32 accumulator across the (R, src) reduction.
#   Hot loop = one bf16 A_tile @ XW_tile dot + f32 row-scale accumulate.
# ----------------------------------------------------------------------------
def _rgcn_agg_kernel(a_ref, xw_ref, dinv_ref, h0_ref, bias_ref, out_ref, *,
                     activation):
    r = pl.program_id(1)
    s = pl.program_id(2)
    nr = pl.num_programs(1)
    ns = pl.num_programs(2)

    # Self/root transform + bias, exactly once per dst tile (first reduction step).
    @pl.when(jnp.logical_and(r == 0, s == 0))
    def _init():
        out_ref[...] = h0_ref[...].astype(jnp.float32) + bias_ref[...]

    # bf16 counts @ bf16 XW -> f32 partial sum, then exact f32 1/deg scale.
    msg = jnp.dot(a_ref[...], xw_ref[...], preferred_element_type=jnp.float32)
    out_ref[...] += msg * dinv_ref[...]

    # Activation applied in place on the last reduction step.
    @pl.when(jnp.logical_and(r == nr - 1, s == ns - 1))
    def _finalize():
        h = out_ref[...]
        if activation == "relu":
            h = jnp.maximum(h, 0.0)
        elif activation == "sigmoid":
            h = jax.nn.sigmoid(h)
        out_ref[...] = h


def rgcn_layer(A, deg_inv, x, w, root, bias, activation, *, tile):
    """A: [R, N, N] bf16 edge counts; deg_inv: [R, N, 1] f32; x: [N, Fin] f32;
    w: [R, Fin, Fout]; root: [Fin, Fout]; bias: [Fout].
    N multiple of `tile`; Fin/Fout multiples of 128 (caller pads)."""
    R, N, _ = A.shape
    Fin = x.shape[1]
    Fout = w.shape[2]

    # Hoisted per-relation transform (relation 0 of w_all == root/self transform).
    w_all = jnp.concatenate([root[None], w], axis=0).astype(jnp.bfloat16)
    xw_all = feat_transform(x.astype(jnp.bfloat16), w_all, tile_n=tile)
    h0 = xw_all[0]    # [N, Fout] bf16 : X @ root
    xw = xw_all[1:]   # [R, N, Fout] bf16 : X @ W_r
    bias2d = bias.reshape(1, Fout).astype(jnp.float32)

    kernel = functools.partial(_rgcn_agg_kernel, activation=activation)
    return pl.pallas_call(
        kernel,
        out_shape=jax.ShapeDtypeStruct((N, Fout), jnp.float32),
        grid_spec=pltpu.PrefetchScalarGridSpec(
            num_scalar_prefetch=0,
            grid=(N // tile, R, N // tile),
            in_specs=[
                pl.BlockSpec((None, tile, tile), lambda i, r, s: (r, i, s)),  # A[r] tile
                pl.BlockSpec((None, tile, Fout), lambda i, r, s: (r, s, 0)),  # XW[r] src rows
                pl.BlockSpec((None, tile, 1), lambda i, r, s: (r, i, 0)),     # 1/deg dst rows
                pl.BlockSpec((tile, Fout), lambda i, r, s: (i, 0)),           # X @ root dst rows
                pl.BlockSpec((1, Fout), lambda i, r, s: (0, 0)),              # bias
            ],
            out_specs=pl.BlockSpec((tile, Fout), lambda i, r, s: (i, 0)),
        ),
        compiler_params=pltpu.CompilerParams(
            dimension_semantics=("parallel", "arbitrary", "arbitrary"),
            vmem_limit_bytes=32 * 1024 * 1024,
        ),
    )(A, xw, deg_inv, h0, bias2d)


# ----------------------------------------------------------------------------
# Glue: dense edge-count adjacency (bf16, exact) + f32 per-(rel, dst) 1/deg.
# ----------------------------------------------------------------------------
def build_adjacency(edge_index, edge_type, num_nodes_padded, num_rels):
    src = edge_index[0]
    dst = edge_index[1]
    # A[r, i, j] = #edges j->i of relation r (small ints: exact in bf16).
    counts = jnp.zeros((num_rels, num_nodes_padded, num_nodes_padded), jnp.bfloat16)
    counts = counts.at[edge_type, dst, src].add(1.0)
    # In-degree per (r, i), computed from the edge list (no dense pass).
    deg = jnp.zeros((num_rels, num_nodes_padded), jnp.float32)
    deg = deg.at[edge_type, dst].add(1.0)
    deg_inv = (1.0 / jnp.maximum(deg, 1.0)).reshape(num_rels, num_nodes_padded, 1)
    return counts, deg_inv


# ----------------------------------------------------------------------------
# Model: deterministic parameter init + forward.
# ----------------------------------------------------------------------------
def init_params(key, num_nodes, emb_dim, hidden_l, num_rels, num_classes):
    ks = jax.random.split(key, 7)

    def kaiming_uniform(k, shape, fan_out):
        # kaiming_uniform, mode='fan_out', nonlinearity='relu': gain=sqrt(2)
        bound = jnp.sqrt(6.0 / fan_out)
        return jax.random.uniform(k, shape, jnp.float32, -bound, bound)

    def glorot(k, shape):
        bound = jnp.sqrt(6.0 / (shape[-2] + shape[-1]))
        return jax.random.uniform(k, shape, jnp.float32, -bound, bound)

    return {
        "embedding": jax.random.normal(ks[0], (num_nodes, emb_dim), jnp.float32),
        "w1": kaiming_uniform(ks[1], (num_rels, emb_dim, hidden_l), hidden_l),
        "root1": glorot(ks[2], (emb_dim, hidden_l)),
        "b1": jnp.zeros((hidden_l,), jnp.float32),
        "w2": kaiming_uniform(ks[3], (num_rels, hidden_l, num_classes), num_classes),
        "root2": glorot(ks[4], (hidden_l, num_classes)),
        "b2": jnp.zeros((num_classes,), jnp.float32),
    }


@functools.partial(jax.jit, static_argnames=("num_nodes", "num_rels", "num_classes"))
def rgcn_forward(params, edge_index, edge_type, *, num_nodes, num_rels, num_classes):
    emb = params["embedding"]
    w1, root1, b1 = params["w1"], params["root1"], params["b1"]
    w2, root2, b2 = params["w2"], params["root2"], params["b2"]

    emb_dim = emb.shape[1]
    hidden_l = w1.shape[2]

    # Node dim padded to a multiple of the tile (so tiles never fall back to
    # 128/256); feature dims zero-padded to 128 lanes.
    n128 = _round_up(num_nodes, 128)
    tile = min(1024, n128)
    n_pad = _round_up(num_nodes, tile)
    e_pad = _round_up(emb_dim, 128)
    h_pad = _round_up(hidden_l, 128)
    c_pad = _round_up(num_classes, 128)

    x = jnp.pad(emb, ((0, n_pad - num_nodes), (0, e_pad - emb_dim)))
    w1p = jnp.pad(w1, ((0, 0), (0, e_pad - emb_dim), (0, h_pad - hidden_l)))
    r1p = jnp.pad(root1, ((0, e_pad - emb_dim), (0, h_pad - hidden_l)))
    b1p = jnp.pad(b1, (0, h_pad - hidden_l))
    w2p = jnp.pad(w2, ((0, 0), (0, h_pad - hidden_l), (0, c_pad - num_classes)))
    r2p = jnp.pad(root2, ((0, h_pad - hidden_l), (0, c_pad - num_classes)))
    b2p = jnp.pad(b2, (0, c_pad - num_classes))

    A, deg_inv = build_adjacency(edge_index, edge_type, n_pad, num_rels)

    h = rgcn_layer(A, deg_inv, x, w1p, r1p, b1p, activation="relu", tile=tile)
    y = rgcn_layer(A, deg_inv, h, w2p, r2p, b2p, activation="sigmoid", tile=tile)
    return y[:num_nodes, :num_classes]


if __name__ == "__main__":
    # Small, forward-consistent shapes.
    num_nodes = 16
    emb_dim = 8
    hidden_l = 16
    num_rels = 3
    num_classes = 4
    num_edges = 32

    key = jax.random.PRNGKey(0)
    k_p, k_src, k_dst, k_rel = jax.random.split(key, 4)

    params = init_params(k_p, num_nodes, emb_dim, hidden_l, num_rels, num_classes)

    src = jax.random.randint(k_src, (num_edges,), 0, num_nodes, dtype=jnp.int32)
    dst = jax.random.randint(k_dst, (num_edges,), 0, num_nodes, dtype=jnp.int32)
    edge_index = jnp.stack([src, dst], axis=0)                       # [2, E]
    edge_type = jax.random.randint(k_rel, (num_edges,), 0, num_rels, dtype=jnp.int32)

    out = rgcn_forward(params, edge_index, edge_type,
                       num_nodes=num_nodes, num_rels=num_rels, num_classes=num_classes)
    out = jax.block_until_ready(out)

    assert out.shape == (num_nodes, num_classes)
    assert bool(jnp.all((out >= 0.0) & (out <= 1.0)))
    print("KERNEL_OK")
</pallas_src>

<mosaic_0001>
module attributes {stable_mosaic.version = 11 : i64} {
  func.func private @main(%arg0: i32) attributes {dimension_semantics = [#tpu.dimension_semantics<core_parallel>], iteration_bounds = array<i64: 2>, tpu.core_type = #tpu.core_type<sc_scalar_subcore>, window_params = []} {
    return
  }
}

module attributes {stable_mosaic.version = 11 : i64} {
  func.func private @main(%arg0: i32) attributes {dimension_semantics = [#tpu.dimension_semantics<core_parallel>], iteration_bounds = array<i64: 2>, tpu.core_type = #tpu.core_type<sc_scalar_subcore>, window_params = []} {
    return
  }
}

module attributes {stable_mosaic.version = 11 : i64} {
  func.func @_feat_transform_kernel(%arg0: i32, %arg1: i32, %arg2: memref<128x128xbf16, #tpu.memory_space<vmem>>, %arg3: memref<1x128x128xbf16, #tpu.memory_space<vmem>>, %arg4: memref<1x128x128xbf16, #tpu.memory_space<vmem>>) attributes {dimension_semantics = [#tpu.dimension_semantics<parallel>, #tpu.dimension_semantics<arbitrary>], iteration_bounds = array<i64: 1, 4>, scalar_prefetch = 0 : i64, scratch_operands = 0 : i64, tpu.core_type = #tpu.core_type<tc>, window_params = [{transform_indices = @transform_0, window_bounds = array<i64: 128, 128>}, {transform_indices = @transform_1, window_bounds = array<i64: 1, 128, 128>}, {transform_indices = @transform_2, window_bounds = array<i64: 1, 128, 128>}]} {
    %c0 = arith.constant 0 : index
    %c0_0 = arith.constant 0 : index
    %0 = vector.load %arg2[%c0, %c0_0] : memref<128x128xbf16, #tpu.memory_space<vmem>>, vector<128x128xbf16>
    %c0_1 = arith.constant 0 : index
    %c0_2 = arith.constant 0 : index
    %c0_3 = arith.constant 0 : index
    %1 = vector.load %arg3[%c0_1, %c0_2, %c0_3] : memref<1x128x128xbf16, #tpu.memory_space<vmem>>, vector<1x128x128xbf16>
    %2 = vector.shape_cast %1 : vector<1x128x128xbf16> to vector<128x128xbf16>
    %cst = arith.constant dense<0.000000e+00> : vector<128x128xf32>
    %3 = tpu.matmul %0, %2, %cst {dimension_numbers = #tpu.dot_dimension_numbers<[1], [0], [0], [1], [0, 0, 1, 1], [], []>} : vector<128x128xbf16>, vector<128x128xbf16>, vector<128x128xf32> -> vector<128x128xf32>
    %4 = arith.truncf %3 : vector<128x128xf32> to vector<128x128xbf16>
    %c0_4 = arith.constant 0 : index
    %c0_5 = arith.constant 0 : index
    %c0_6 = arith.constant 0 : index
    %5 = vector.load %arg4[%c0_4, %c0_5, %c0_6] : memref<1x128x128xbf16, #tpu.memory_space<vmem>>, vector<1x128x128xbf16>
    %6 = vector.shape_cast %5 : vector<1x128x128xbf16> to vector<128x128xbf16>
    %7 = vector.shape_cast %4 : vector<128x128xbf16> to vector<1x128x128xbf16>
    tpu.vector_store %arg4[%c0_4, %c0_5, %c0_6], %7 {strides = array<i32>} : memref<1x128x128xbf16, #tpu.memory_space<vmem>>, vector<1x128x128xbf16>,
    return
  }
  func.func @transform_0(%arg0: i32, %arg1: i32) -> (i32, i32) {
    %c0_i32 = arith.constant 0 : i32
    %c0_i32_0 = arith.constant 0 : i32
    return %arg0, %c0_i32 : i32, i32
  }
  func.func @transform_1(%arg0: i32, %arg1: i32) -> (i32, i32, i32) {
    %c0_i32 = arith.constant 0 : i32
    %c0_i32_0 = arith.constant 0 : i32
    %c0_i32_1 = arith.constant 0 : i32
    return %arg1, %c0_i32, %c0_i32_0 : i32, i32, i32
  }
  func.func @transform_2(%arg0: i32, %arg1: i32) -> (i32, i32, i32) {
    %c0_i32 = arith.constant 0 : i32
    %c0_i32_0 = arith.constant 0 : i32
    return %arg1, %arg0, %c0_i32 : i32, i32, i32
  }
}

module attributes {stable_mosaic.version = 11 : i64} {
  func.func @_rgcn_agg_kernel(%arg0: i32, %arg1: i32, %arg2: i32, %arg3: memref<1x128x128xbf16, #tpu.memory_space<vmem>>, %arg4: memref<1x128x128xbf16, #tpu.memory_space<vmem>>, %arg5: memref<1x128x1xf32, #tpu.memory_space<vmem>>, %arg6: memref<128x128xbf16, #tpu.memory_space<vmem>>, %arg7: memref<1x128xf32, #tpu.memory_space<vmem>>, %arg8: memref<128x128xf32, #tpu.memory_space<vmem>>) attributes {dimension_semantics = [#tpu.dimension_semantics<parallel>, #tpu.dimension_semantics<arbitrary>, #tpu.dimension_semantics<arbitrary>], iteration_bounds = array<i64: 1, 3, 1>, scalar_prefetch = 0 : i64, scratch_operands = 0 : i64, tpu.core_type = #tpu.core_type<tc>, window_params = [{transform_indices = @transform_0, window_bounds = array<i64: 1, 128, 128>}, {transform_indices = @transform_1, window_bounds = array<i64: 1, 128, 128>}, {transform_indices = @transform_2, window_bounds = array<i64: 1, 128, 1>}, {transform_indices = @transform_3, window_bounds = array<i64: 128, 128>}, {pipeline_mode = #tpu.pipeline_mode<synchronous>, transform_indices = @transform_4, window_bounds = array<i64: 1, 128>}, {transform_indices = @transform_5, window_bounds = array<i64: 128, 128>}]} {
    %c0_i32 = arith.constant 0 : i32
    %0 = arith.cmpi eq, %arg1, %c0_i32 : i32
    %c0_i32_0 = arith.constant 0 : i32
    %1 = arith.cmpi eq, %arg2, %c0_i32_0 : i32
    %2 = arith.andi %0, %1 : i1
    %3 = arith.extui %2 : i1 to i32
    %c0_i32_1 = arith.constant 0 : i32
    %4 = arith.cmpi ne, %3, %c0_i32_1 : i32
    scf.if %4 {
      %c0_16 = arith.constant 0 : index
      %c0_17 = arith.constant 0 : index
      %22 = vector.load %arg6[%c0_16, %c0_17] : memref<128x128xbf16, #tpu.memory_space<vmem>>, vector<128x128xbf16>
      %23 = arith.extf %22 : vector<128x128xbf16> to vector<128x128xf32>
      %c0_18 = arith.constant 0 : index
      %c0_19 = arith.constant 0 : index
      %24 = vector.load %arg7[%c0_18, %c0_19] : memref<1x128xf32, #tpu.memory_space<vmem>>, vector<1x128xf32>
      %25 = vector.broadcast %24 : vector<1x128xf32> to vector<128x128xf32>
      %26 = arith.addf %23, %25 : vector<128x128xf32>
      %c0_20 = arith.constant 0 : index
      %c0_21 = arith.constant 0 : index
      %27 = vector.load %arg8[%c0_20, %c0_21] : memref<128x128xf32, #tpu.memory_space<vmem>>, vector<128x128xf32>
      tpu.vector_store %arg8[%c0_20, %c0_21], %26 {strides = array<i32>} : memref<128x128xf32, #tpu.memory_space<vmem>>, vector<128x128xf32>,
    } else {
    }
    %c0 = arith.constant 0 : index
    %c0_2 = arith.constant 0 : index
    %c0_3 = arith.constant 0 : index
    %5 = vector.load %arg3[%c0, %c0_2, %c0_3] : memref<1x128x128xbf16, #tpu.memory_space<vmem>>, vector<1x128x128xbf16>
    %6 = vector.shape_cast %5 : vector<1x128x128xbf16> to vector<128x128xbf16>
    %c0_4 = arith.constant 0 : index
    %c0_5 = arith.constant 0 : index
    %c0_6 = arith.constant 0 : index
    %7 = vector.load %arg4[%c0_4, %c0_5, %c0_6] : memref<1x128x128xbf16, #tpu.memory_space<vmem>>, vector<1x128x128xbf16>
    %8 = vector.shape_cast %7 : vector<1x128x128xbf16> to vector<128x128xbf16>
    %cst = arith.constant dense<0.000000e+00> : vector<128x128xf32>
    %9 = tpu.matmul %6, %8, %cst {dimension_numbers = #tpu.dot_dimension_numbers<[1], [0], [0], [1], [0, 0, 1, 1], [], []>} : vector<128x128xbf16>, vector<128x128xbf16>, vector<128x128xf32> -> vector<128x128xf32>
    %c0_7 = arith.constant 0 : index
    %c0_8 = arith.constant 0 : index
    %10 = vector.load %arg8[%c0_7, %c0_8] : memref<128x128xf32, #tpu.memory_space<vmem>>, vector<128x128xf32>
    %c0_9 = arith.constant 0 : index
    %c0_10 = arith.constant 0 : index
    %c0_11 = arith.constant 0 : index
    %11 = vector.load %arg5[%c0_9, %c0_10, %c0_11] : memref<1x128x1xf32, #tpu.memory_space<vmem>>, vector<1x128x1xf32>
    %12 = vector.shape_cast %11 : vector<1x128x1xf32> to vector<128x1xf32>
    %13 = vector.broadcast %12 : vector<128x1xf32> to vector<128x128xf32>
    %14 = arith.mulf %9, %13 : vector<128x128xf32>
    %15 = arith.addf %10, %14 : vector<128x128xf32>
    %c0_12 = arith.constant 0 : index
    %c0_13 = arith.constant 0 : index
    %16 = vector.load %arg8[%c0_12, %c0_13] : memref<128x128xf32, #tpu.memory_space<vmem>>, vector<128x128xf32>
    tpu.vector_store %arg8[%c0_12, %c0_13], %15 {strides = array<i32>} : memref<128x128xf32, #tpu.memory_space<vmem>>, vector<128x128xf32>,
    %c2_i32 = arith.constant 2 : i32
    %17 = arith.cmpi eq, %arg1, %c2_i32 : i32
    %c0_i32_14 = arith.constant 0 : i32
    %18 = arith.cmpi eq, %arg2, %c0_i32_14 : i32
    %19 = arith.andi %17, %18 : i1
    %20 = arith.extui %19 : i1 to i32
    %c0_i32_15 = arith.constant 0 : i32
    %21 = arith.cmpi ne, %20, %c0_i32_15 : i32
    scf.if %21 {
      %c0_16 = arith.constant 0 : index
      %c0_17 = arith.constant 0 : index
      %22 = vector.load %arg8[%c0_16, %c0_17] : memref<128x128xf32, #tpu.memory_space<vmem>>, vector<128x128xf32>
      %cst_18 = arith.constant 0.000000e+00 : f32
      %23 = vector.broadcast %cst_18 : f32 to vector<128x128xf32>
      %24 = arith.maximumf %22, %23 : vector<128x128xf32>
      %c0_19 = arith.constant 0 : index
      %c0_20 = arith.constant 0 : index
      %25 = vector.load %arg8[%c0_19, %c0_20] : memref<128x128xf32, #tpu.memory_space<vmem>>, vector<128x128xf32>
      tpu.vector_store %arg8[%c0_19, %c0_20], %24 {strides = array<i32>} : memref<128x128xf32, #tpu.memory_space<vmem>>, vector<128x128xf32>,
    } else {
    }
    return
  }
  func.func @transform_0(%arg0: i32, %arg1: i32, %arg2: i32) -> (i32, i32, i32) {
    %c0_i32 = arith.constant 0 : i32
    return %arg1, %arg0, %arg2 : i32, i32, i32
  }
  func.func @transform_1(%arg0: i32, %arg1: i32, %arg2: i32) -> (i32, i32, i32) {
    %c0_i32 = arith.constant 0 : i32
    %c0_i32_0 = arith.constant 0 : i32
    return %arg1, %arg2, %c0_i32 : i32, i32, i32
  }
  func.func @transform_2(%arg0: i32, %arg1: i32, %arg2: i32) -> (i32, i32, i32) {
    %c0_i32 = arith.constant 0 : i32
    %c0_i32_0 = arith.constant 0 : i32
    return %arg1, %arg0, %c0_i32 : i32, i32, i32
  }
  func.func @transform_3(%arg0: i32, %arg1: i32, %arg2: i32) -> (i32, i32) {
    %c0_i32 = arith.constant 0 : i32
    %c0_i32_0 = arith.constant 0 : i32
    return %arg0, %c0_i32 : i32, i32
  }
  func.func @transform_4(%arg0: i32, %arg1: i32, %arg2: i32) -> (i32, i32) {
    %c0_i32 = arith.constant 0 : i32
    %c0_i32_0 = arith.constant 0 : i32
    %c0_i32_1 = arith.constant 0 : i32
    return %c0_i32, %c0_i32_0 : i32, i32
  }
  func.func @transform_5(%arg0: i32, %arg1: i32, %arg2: i32) -> (i32, i32) {
    %c0_i32 = arith.constant 0 : i32
    %c0_i32_0 = arith.constant 0 : i32
    return %arg0, %c0_i32 : i32, i32
  }
}

module attributes {stable_mosaic.version = 11 : i64} {
  func.func @_rgcn_agg_kernel(%arg0: i32, %arg1: i32, %arg2: i32, %arg3: memref<1x128x128xbf16, #tpu.memory_space<vmem>>, %arg4: memref<1x128x128xbf16, #tpu.memory_space<vmem>>, %arg5: memref<1x128x1xf32, #tpu.memory_space<vmem>>, %arg6: memref<128x128xbf16, #tpu.memory_space<vmem>>, %arg7: memref<1x128xf32, #tpu.memory_space<vmem>>, %arg8: memref<128x128xf32, #tpu.memory_space<vmem>>) attributes {dimension_semantics = [#tpu.dimension_semantics<parallel>, #tpu.dimension_semantics<arbitrary>, #tpu.dimension_semantics<arbitrary>], iteration_bounds = array<i64: 1, 3, 1>, scalar_prefetch = 0 : i64, scratch_operands = 0 : i64, tpu.core_type = #tpu.core_type<tc>, window_params = [{transform_indices = @transform_0, window_bounds = array<i64: 1, 128, 128>}, {transform_indices = @transform_1, window_bounds = array<i64: 1, 128, 128>}, {transform_indices = @transform_2, window_bounds = array<i64: 1, 128, 1>}, {transform_indices = @transform_3, window_bounds = array<i64: 128, 128>}, {pipeline_mode = #tpu.pipeline_mode<synchronous>, transform_indices = @transform_4, window_bounds = array<i64: 1, 128>}, {transform_indices = @transform_5, window_bounds = array<i64: 128, 128>}]} {
    %c0_i32 = arith.constant 0 : i32
    %0 = arith.cmpi eq, %arg1, %c0_i32 : i32
    %c0_i32_0 = arith.constant 0 : i32
    %1 = arith.cmpi eq, %arg2, %c0_i32_0 : i32
    %2 = arith.andi %0, %1 : i1
    %3 = arith.extui %2 : i1 to i32
    %c0_i32_1 = arith.constant 0 : i32
    %4 = arith.cmpi ne, %3, %c0_i32_1 : i32
    scf.if %4 {
      %c0_16 = arith.constant 0 : index
      %c0_17 = arith.constant 0 : index
      %22 = vector.load %arg6[%c0_16, %c0_17] : memref<128x128xbf16, #tpu.memory_space<vmem>>, vector<128x128xbf16>
      %23 = arith.extf %22 : vector<128x128xbf16> to vector<128x128xf32>
      %c0_18 = arith.constant 0 : index
      %c0_19 = arith.constant 0 : index
      %24 = vector.load %arg7[%c0_18, %c0_19] : memref<1x128xf32, #tpu.memory_space<vmem>>, vector<1x128xf32>
      %25 = vector.broadcast %24 : vector<1x128xf32> to vector<128x128xf32>
      %26 = arith.addf %23, %25 : vector<128x128xf32>
      %c0_20 = arith.constant 0 : index
      %c0_21 = arith.constant 0 : index
      %27 = vector.load %arg8[%c0_20, %c0_21] : memref<128x128xf32, #tpu.memory_space<vmem>>, vector<128x128xf32>
      tpu.vector_store %arg8[%c0_20, %c0_21], %26 {strides = array<i32>} : memref<128x128xf32, #tpu.memory_space<vmem>>, vector<128x128xf32>,
    } else {
    }
    %c0 = arith.constant 0 : index
    %c0_2 = arith.constant 0 : index
    %c0_3 = arith.constant 0 : index
    %5 = vector.load %arg3[%c0, %c0_2, %c0_3] : memref<1x128x128xbf16, #tpu.memory_space<vmem>>, vector<1x128x128xbf16>
    %6 = vector.shape_cast %5 : vector<1x128x128xbf16> to vector<128x128xbf16>
    %c0_4 = arith.constant 0 : index
    %c0_5 = arith.constant 0 : index
    %c0_6 = arith.constant 0 : index
    %7 = vector.load %arg4[%c0_4, %c0_5, %c0_6] : memref<1x128x128xbf16, #tpu.memory_space<vmem>>, vector<1x128x128xbf16>
    %8 = vector.shape_cast %7 : vector<1x128x128xbf16> to vector<128x128xbf16>
    %cst = arith.constant dense<0.000000e+00> : vector<128x128xf32>
    %9 = tpu.matmul %6, %8, %cst {dimension_numbers = #tpu.dot_dimension_numbers<[1], [0], [0], [1], [0, 0, 1, 1], [], []>} : vector<128x128xbf16>, vector<128x128xbf16>, vector<128x128xf32> -> vector<128x128xf32>
    %c0_7 = arith.constant 0 : index
    %c0_8 = arith.constant 0 : index
    %10 = vector.load %arg8[%c0_7, %c0_8] : memref<128x128xf32, #tpu.memory_space<vmem>>, vector<128x128xf32>
    %c0_9 = arith.constant 0 : index
    %c0_10 = arith.constant 0 : index
    %c0_11 = arith.constant 0 : index
    %11 = vector.load %arg5[%c0_9, %c0_10, %c0_11] : memref<1x128x1xf32, #tpu.memory_space<vmem>>, vector<1x128x1xf32>
    %12 = vector.shape_cast %11 : vector<1x128x1xf32> to vector<128x1xf32>
    %13 = vector.broadcast %12 : vector<128x1xf32> to vector<128x128xf32>
    %14 = arith.mulf %9, %13 : vector<128x128xf32>
    %15 = arith.addf %10, %14 : vector<128x128xf32>
    %c0_12 = arith.constant 0 : index
    %c0_13 = arith.constant 0 : index
    %16 = vector.load %arg8[%c0_12, %c0_13] : memref<128x128xf32, #tpu.memory_space<vmem>>, vector<128x128xf32>
    tpu.vector_store %arg8[%c0_12, %c0_13], %15 {strides = array<i32>} : memref<128x128xf32, #tpu.memory_space<vmem>>, vector<128x128xf32>,
    %c2_i32 = arith.constant 2 : i32
    %17 = arith.cmpi eq, %arg1, %c2_i32 : i32
    %c0_i32_14 = arith.constant 0 : i32
    %18 = arith.cmpi eq, %arg2, %c0_i32_14 : i32
    %19 = arith.andi %17, %18 : i1
    %20 = arith.extui %19 : i1 to i32
    %c0_i32_15 = arith.constant 0 : i32
    %21 = arith.cmpi ne, %20, %c0_i32_15 : i32
    scf.if %21 {
      %c0_16 = arith.constant 0 : index
      %c0_17 = arith.constant 0 : index
      %22 = vector.load %arg8[%c0_16, %c0_17] : memref<128x128xf32, #tpu.memory_space<vmem>>, vector<128x128xf32>
      %23 = arith.negf %22 : vector<128x128xf32>
      %24 = math.exp %23 : vector<128x128xf32>
      %cst_18 = arith.constant 1.000000e+00 : f32
      %25 = vector.broadcast %cst_18 : f32 to vector<128x128xf32>
      %26 = arith.addf %25, %24 : vector<128x128xf32>
      %27 = arith.divf %25, %26 : vector<128x128xf32>
      %c0_19 = arith.constant 0 : index
      %c0_20 = arith.constant 0 : index
      %28 = vector.load %arg8[%c0_19, %c0_20] : memref<128x128xf32, #tpu.memory_space<vmem>>, vector<128x128xf32>
      tpu.vector_store %arg8[%c0_19, %c0_20], %27 {strides = array<i32>} : memref<128x128xf32, #tpu.memory_space<vmem>>, vector<128x128xf32>,
    } else {
    }
    return
  }
  func.func @transform_0(%arg0: i32, %arg1: i32, %arg2: i32) -> (i32, i32, i32) {
    %c0_i32 = arith.constant 0 : i32
    return %arg1, %arg0, %arg2 : i32, i32, i32
  }
  func.func @transform_1(%arg0: i32, %arg1: i32, %arg2: i32) -> (i32, i32, i32) {
    %c0_i32 = arith.constant 0 : i32
    %c0_i32_0 = arith.constant 0 : i32
    return %arg1, %arg2, %c0_i32 : i32, i32, i32
  }
  func.func @transform_2(%arg0: i32, %arg1: i32, %arg2: i32) -> (i32, i32, i32) {
    %c0_i32 = arith.constant 0 : i32
    %c0_i32_0 = arith.constant 0 : i32
    return %arg1, %arg0, %c0_i32 : i32, i32, i32
  }
  func.func @transform_3(%arg0: i32, %arg1: i32, %arg2: i32) -> (i32, i32) {
    %c0_i32 = arith.constant 0 : i32
    %c0_i32_0 = arith.constant 0 : i32
    return %arg0, %c0_i32 : i32, i32
  }
  func.func @transform_4(%arg0: i32, %arg1: i32, %arg2: i32) -> (i32, i32) {
    %c0_i32 = arith.constant 0 : i32
    %c0_i32_0 = arith.constant 0 : i32
    %c0_i32_1 = arith.constant 0 : i32
    return %c0_i32, %c0_i32_0 : i32, i32
  }
  func.func @transform_5(%arg0: i32, %arg1: i32, %arg2: i32) -> (i32, i32) {
    %c0_i32 = arith.constant 0 : i32
    %c0_i32_0 = arith.constant 0 : i32
    return %arg0, %c0_i32 : i32, i32
  }
}

</mosaic_0001>

<bundles_post_ra>
// kernel: rgcn_forward.4
= control target key start
LH: loop header
LB: loop body
LE: loop exit
PB: predicated region body
PF: predicated region fallthrough
CT: control target
= control target key end

     0   :  { %s843_s9 = smov 0   ;;  %s845_s10 = smov 0   ;;  %s917_s0 = inlined_call_operand.vmem [shape: bf16[128,128], index: 0, kind: input, shape index: {}]   ;;  %s918_s1 = inlined_call_operand.vmem [shape: bf16[4,128,128], index: 1, kind: input, shape index: {}]   ;;  %s919_s2 = inlined_call_operand.vmem [shape: bf16[4,128,128], index: 2, kind: output, shape index: {}]  }
   0x1   :  { %s847_s11 = smov 0  }
   0x2 LB: > { %s21_s12 = sadd.s32 1, %s822_s10  ;;  %p596_p0 = scmp.ge.s32.totalorder %s826_s11, 1  ;;  %s826_s11 = sphi %s847_s11, %s12_s11   ;;  %s822_s10 = sphi %s845_s10, %s921_s10   ;;  %s818_s9 = sphi %s843_s9, %s920_s9  }
   0x3   : > { %p22_p1 = scmp.ge.s32.totalorder %s21_s12, 4  ;;  %p137_p2 = scmp.lt.s32.totalorder %s826_s11, 5 }
   0x5   : > { %s923_s12 = smov (%p22_p1, %s21_s12), 0  ;;  %p138_p3 = pnand %p596_p0, %p137_p2 }
   0x6   : > { %p174_p4 = scmp.lt.s32.totalorder (!%p138_p3), %s818_s9, 3 }
   0x7   : > { %141 = sbr.rel (%p138_p3) target bundleno = 258 (0x102), region = 28 }
   0xc   : > { %v796_v0 = vld [vmem:[%s917_s0] sm:$0xff]   ;;  %s925_s9 = smov (!%p174_p4, %s818_s9), 3  ;;  %v798_v10 = vld [vmem:[%s917_s0 + $0x8] sm:$0xff]   ;;  %v800_v12 = vld [vmem:[%s917_s0 + $0x10] sm:$0xff]  }
   0xd   : > { %v797_v1 = vld [vmem:[%s917_s0 + $0x20] sm:$0xff]   ;;  %732 = vmatprep.mubr.bf16.mxu0 %v796_v0  ;;  %s635_s17 = sshll.u32 %s925_s9, 6  ;;  %v799_v11 = vld [vmem:[%s917_s0 + $0x28] sm:$0xff]   ;;  %v801_v13 = vld [vmem:[%s917_s0 + $0x30] sm:$0xff]  }
   0xe   : > { %740 = vmatprep.mubr.bf16.mxu1 %v797_v1  ;;  %s875_s20 = scalar_lea.vmem %s918_s1, %s635_s17  ;;  %v802_v14 = vld [vmem:[%s917_s0 + $0x18] sm:$0xff]   ;;  %s187_s7 = scalar_lea.vmem %s919_s2, %s635_s17 }
   0xf   : > { %v788_v2 = vld [vmem:[%s875_s20 + $0x38] sm:$0xff]   ;;  %v789_v3 = vld [vmem:[%s875_s20 + $0x30] sm:$0xff]   ;;  %v790_v4 = vld [vmem:[%s875_s20 + $0x28] sm:$0xff]  }
  0x10   : > { %716 = vmatprep.subr.bf16.mxu0 %v788_v2  ;;  %748 = vmatprep.subr.bf16.mxu1 %v788_v2  ;;  %v791_v5 = vld [vmem:[%s875_s20 + $0x20] sm:$0xff]   ;;  %v792_v6 = vld [vmem:[%s875_s20 + $0x18] sm:$0xff]   ;;  %v793_v7 = vld [vmem:[%s875_s20 + $0x10] sm:$0xff]  }
  0x11   : > { %717 = vmatpush3.bf16.msra.mxu0 %v788_v2  ;;  %756 = vmatpush3.bf16.msra.mxu1 %v788_v2  ;;  %v794_v8 = vld [vmem:[%s875_s20 + $0x8] sm:$0xff]   ;;  %v795_v9 = vld [vmem:[%s875_s20] sm:$0xff]   ;;  %v803_v15 = vld [vmem:[%s917_s0 + $0x38] sm:$0xff]  }
  0x12   : > { %718 = vmatprep.subr.bf16.mxu0 %v789_v3  ;;  %749 = vmatprep.subr.bf16.mxu1 %v789_v3 }
  0x15   : > { %719 = vmatpush3.bf16.msra.mxu0 %v789_v3  ;;  %757 = vmatpush3.bf16.msra.mxu1 %v789_v3 }
  0x16   : > { %720 = vmatprep.subr.bf16.mxu0 %v790_v4  ;;  %750 = vmatprep.subr.bf16.mxu1 %v790_v4 }
  0x19   : > { %721 = vmatpush3.bf16.msra.mxu0 %v790_v4  ;;  %758 = vmatpush3.bf16.msra.mxu1 %v790_v4 }
  0x1a   : > { %722 = vmatprep.subr.bf16.mxu0 %v791_v5  ;;  %751 = vmatprep.subr.bf16.mxu1 %v791_v5 }
  0x1d   : > { %723 = vmatpush3.bf16.msra.mxu0 %v791_v5  ;;  %759 = vmatpush3.bf16.msra.mxu1 %v791_v5 }
  0x1e   : > { %724 = vmatprep.subr.bf16.mxu0 %v792_v6  ;;  %752 = vmatprep.subr.bf16.mxu1 %v792_v6 }
  0x21   : > { %725 = vmatpush3.bf16.msra.mxu0 %v792_v6  ;;  %760 = vmatpush3.bf16.msra.mxu1 %v792_v6 }
  0x22   : > { %726 = vmatprep.subr.bf16.mxu0 %v793_v7  ;;  %753 = vmatprep.subr.bf16.mxu1 %v793_v7 }
  0x25   : > { %727 = vmatpush3.bf16.msra.mxu0 %v793_v7  ;;  %761 = vmatpush3.bf16.msra.mxu1 %v793_v7 }
  0x26   : > { %728 = vmatprep.subr.bf16.mxu0 %v794_v8  ;;  %754 = vmatprep.subr.bf16.mxu1 %v794_v8 }
  0x29   : > { %729 = vmatpush3.bf16.msra.mxu0 %v794_v8  ;;  %762 = vmatpush3.bf16.msra.mxu1 %v794_v8 }
  0x2a   : > { %730 = vmatprep.subr.bf16.mxu0 %v795_v9  ;;  %755 = vmatprep.subr.bf16.mxu1 %v795_v9 }
  0x2d   : > { %731 = vmatpush3.bf16.msra.mxu0 %v795_v9  ;;  %763 = vmatpush3.bf16.msra.mxu1 %v795_v9 }
  0x30   : > { %733 = vmatmul.mubr.bf16.vlgmr.msra.gmra.mxu0 %v798_v10  ;;  %741 = vmatmul.mubr.bf16.vlgmr.msra.gmra.mxu1 %v799_v11 }
  0x31   : > { %736 = vmatprep.mubr.bf16.mxu0 %v800_v12  ;;  %744 = vmatprep.mubr.bf16.mxu1 %v801_v13 }
  0x38   : > { %737 = vmatmul.mubr.bf16.gmra.mxu0 %v802_v14  ;;  %745 = vmatmul.mubr.bf16.gmra.mxu1 %v803_v15 }
  0xf0   : > { %v734_v16 = vpop.f32.mrf.mxu0  ;;  %v742_v17 = vpop.f32.mrf.mxu1 }
  0xf2   : > { %v352_v18 = vpop.f32.mrf.mxu0  ;;  %v384_v19 = vpop.f32.mrf.mxu1 }
  0xf4   : > { %v735_v20 = vpop.f32.mrf.mxu0  ;;  %v743_v21 = vpop.f32.mrf.mxu1 }
  0xf5   : > { %v661_v22 = vpack.c.bf16 %v735_v20, %v734_v16  ;;  %v681_v23 = vpack.c.bf16 %v743_v21, %v742_v17 }
  0xf6   : > { %v355_v24 = vpop.f32.mrf.mxu0  ;;  %v387_v25 = vpop.f32.mrf.mxu1 }
  0xf7   : > { %693 = vst [vmem:[%s187_s7 + $0x8] sm:$0xff] %v661_v22   ;;  %697 = vst [vmem:[%s187_s7 + $0x28] sm:$0xff] %v681_v23   ;;  %v656_v26 = vpack.c.bf16 %v355_v24, %v352_v18  ;;  %v676_v27 = vpack.c.bf16 %v387_v25, %v384_v19 }
  0xf8   : > { %v738_v28 = vpop.f32.mrf.mxu0  ;;  %v746_v29 = vpop.f32.mrf.mxu1 }
  0xf9   : > { %657 = vst [vmem:[%s187_s7] sm:$0xff] %v656_v26   ;;  %696 = vst [vmem:[%s187_s7 + $0x20] sm:$0xff] %v676_v27  }
  0xfa   : > { %v368_v30 = vpop.f32.mrf.mxu0  ;;  %v400_v31 = vpop.f32.mrf.mxu1 }
  0xfc   : > { %v739_v32 = vpop.f32.mrf.mxu0  ;;  %v747_v33 = vpop.f32.mrf.mxu1 }
  0xfd   : > { %v671_v34 = vpack.c.bf16 %v739_v32, %v738_v28  ;;  %v691_v35 = vpack.c.bf16 %v747_v33, %v746_v29 }
  0xfe   : > { %v371_v36 = vpop.f32.mrf.mxu0  ;;  %v403_v37 = vpop.f32.mrf.mxu1 }
  0xff   : > { %695 = vst [vmem:[%s187_s7 + $0x18] sm:$0xff] %v671_v34   ;;  %699 = vst [vmem:[%s187_s7 + $0x38] sm:$0xff] %v691_v35   ;;  %v666_v38 = vpack.c.bf16 %v371_v36, %v368_v30  ;;  %v686_v39 = vpack.c.bf16 %v403_v37, %v400_v31 }
 0x101   : > { %694 = vst [vmem:[%s187_s7 + $0x10] sm:$0xff] %v666_v38   ;;  %698 = vst [vmem:[%s187_s7 + $0x30] sm:$0xff] %v686_v39  }
 0x102 PF: > { %s12_s11 = sadd.s32 1, %s826_s11   ;;  %s920_s9 = smov %s822_s10 }
 0x103   : > { %p9_p5 = scmp.ge.s32.totalorder %s12_s11, 6   ;;  %s921_s10 = smov %s923_s12 }
 0x105   :  { %11 = sbr.rel (!%p9_p5) target bundleno = 2 (0x2), region = 61 }

// kernel: rgcn_forward.5
= control target key start
LH: loop header
LB: loop body
LE: loop exit
PB: predicated region body
PF: predicated region fallthrough
CT: control target
= control target key end

     0   :  { %s1247_s18 = smov 0   ;;  %s1249_s19 = smov 0   ;;  %s1605_s0 = inlined_call_operand.vmem [shape: bf16[3,128,128], index: 0, kind: input, shape index: {}]   ;;  %s1606_s1 = inlined_call_operand.vmem [shape: bf16[3,128,128], index: 1, kind: input, shape index: {}]   ;;  %s1607_s2 = inlined_call_operand.vmem [shape: f32[3,128,1], index: 2, kind: input, shape index: {}]   ;;  %s1608_s3 = inlined_call_operand.vmem [shape: bf16[128,128], index: 3, kind: input, shape index: {}]   ;;  %s1609_s4 = inlined_call_operand.vmem [shape: f32[1,128], index: 4, kind: input, shape index: {}]   ;;  %s1610_s5 = inlined_call_operand.vmem [shape: f32[128,128], index: 5, kind: output, shape index: {}]  }
   0x1   :  { %s1251_s20 = smov 0  }
   0x2 LB: > { %s30_s21 = sadd.s32 1, %s1210_s19  ;;  %p1011_p0 = scmp.ge.s32.totalorder %s1214_s20, 1  ;;  %s1214_s20 = sphi %s1251_s20, %s15_s20   ;;  %s1210_s19 = sphi %s1249_s19, %s1612_s19   ;;  %s1206_s18 = sphi %s1247_s18, %s1611_s18  }
   0x3   : > { %p32_p1 = scmp.ge.s32.totalorder %s30_s21, 3  ;;  %p263_p2 = scmp.lt.s32.totalorder %s1214_s20, 4 }
   0x5   : > { %s1614_s21 = smov (%p32_p1, %s30_s21), 0  ;;  %p264_p3 = pnand %p1011_p0, %p263_p2 }
   0x6   : > { %p322_p4 = scmp.lt.s32.totalorder (!%p264_p3), %s1206_s18, 2  ;;  %p367_p5 = scmp.eq.s32.totalorder (!%p264_p3), %s1206_s18, 0 }
   0x7   : > { %267 = sbr.rel (%p264_p3) target bundleno = 282 (0x11a), region = 40 }
   0xc   : > { %s323_s22 = scalar_select %p322_p4, %s1206_s18, 2  ;;  %v1047_v0 = vld [vmem:[%s1608_s3] sm:$0xff] (%p367_p5)   ;;  %v1078_v2 = vld [vmem:[%s1608_s3 + $0x8] sm:$0xff] (%p367_p5)   ;;  %v1079_v7 = vld [vmem:[%s1608_s3 + $0x10] sm:$0xff] (%p367_p5)  }
   0xd   : > { %372 = sbr.rel (!%p367_p5) target bundleno = 25 (0x19), region = 44  ;;  %v1019_v1 = vld [vmem:[%s1609_s4] ss:$0 sm:$0xff] (%p367_p5)  ;;  %v1048_v3 = vunpack.c.l.bf16 (%p367_p5), %v1047_v0  ;;  %v1049_v4 = vunpack.c.h.bf16 (%p367_p5), %v1047_v0  ;;  %v1052_v5 = vunpack.c.l.bf16 (%p367_p5), %v1078_v2  ;;  %v1053_v6 = vunpack.c.h.bf16 (%p367_p5), %v1078_v2  ;;  %v1080_v8 = vld [vmem:[%s1608_s3 + $0x18] sm:$0xff] (%p367_p5)   ;;  %v1082_v14 = vld [vmem:[%s1608_s3 + $0x28] sm:$0xff] (%p367_p5)  }
   0xe   : > { %s1041_s23 = sshll.u32 %s323_s22, 6  ;;  %s1043_s24 = sshll.u32 %s323_s22, 7  ;;  %v1056_v9 = vunpack.c.l.bf16 (%p367_p5), %v1079_v7  ;;  %v1057_v10 = vunpack.c.h.bf16 (%p367_p5), %v1079_v7  ;;  %v1060_v11 = vunpack.c.l.bf16 (%p367_p5), %v1080_v8  ;;  %v1061_v12 = vunpack.c.h.bf16 (%p367_p5), %v1080_v8  ;;  %v1081_v13 = vld [vmem:[%s1608_s3 + $0x20] sm:$0xff] (%p367_p5)   ;;  %v1083_v19 = vld [vmem:[%s1608_s3 + $0x30] sm:$0xff] (%p367_p5)   ;;  %v1084_v20 = vld [vmem:[%s1608_s3 + $0x38] sm:$0xff] (%p367_p5)  }
   0xf   : > { %s1273_s27 = scalar_lea.vmem %s1605_s0, %s1041_s23  ;;  %s1278_s30 = scalar_lea.vmem %s1606_s1, %s1041_s23  ;;  %v412_v15 = vadd.f32 (%p367_p5), %v1048_v3, %v1019_v1  ;;  %v413_v16 = vadd.f32 (%p367_p5), %v1049_v4, %v1019_v1  ;;  %v414_v17 = vadd.f32 (%p367_p5), %v1052_v5, %v1019_v1  ;;  %v415_v18 = vadd.f32 (%p367_p5), %v1053_v6, %v1019_v1 }
  0x10   : > { %s1283_s8 = scalar_lea.vmem %s1607_s2, %s1043_s24  ;;  %v416_v21 = vadd.f32 (%p367_p5), %v1056_v9, %v1019_v1  ;;  %v417_v22 = vadd.f32 (%p367_p5), %v1057_v10, %v1019_v1  ;;  %v418_v23 = vadd.f32 (%p367_p5), %v1060_v11, %v1019_v1  ;;  %v419_v24 = vadd.f32 (%p367_p5), %v1061_v12, %v1019_v1 }
  0x11   : > { %428 = vst [vmem:[%s1610_s5] sm:$0xff] (%p367_p5), %v412_v15  ;;  %429 = vst [vmem:[%s1610_s5 + $0x8] sm:$0xff] (%p367_p5), %v413_v16  ;;  %v1064_v25 = vunpack.c.l.bf16 (%p367_p5), %v1081_v13  ;;  %v1065_v26 = vunpack.c.h.bf16 (%p367_p5), %v1081_v13  ;;  %v1068_v27 = vunpack.c.l.bf16 (%p367_p5), %v1082_v14  ;;  %v1069_v28 = vunpack.c.h.bf16 (%p367_p5), %v1082_v14 }
  0x12   : > { %430 = vst [vmem:[%s1610_s5 + $0x10] sm:$0xff] %v414_v17  ;;  %431 = vst [vmem:[%s1610_s5 + $0x18] sm:$0xff] %v415_v18  ;;  %v1072_v29 = vunpack.c.l.bf16 %v1083_v19  ;;  %v1073_v30 = vunpack.c.h.bf16 %v1083_v19  ;;  %v1076_v31 = vunpack.c.l.bf16 %v1084_v20  ;;  %v1077_v32 = vunpack.c.h.bf16 %v1084_v20 }
  0x13   : > { %432 = vst [vmem:[%s1610_s5 + $0x20] sm:$0xff] %v416_v21  ;;  %433 = vst [vmem:[%s1610_s5 + $0x28] sm:$0xff] %v417_v22  ;;  %v420_v33 = vadd.f32 %v1064_v25, %v1019_v1  ;;  %v421_v34 = vadd.f32 %v1065_v26, %v1019_v1  ;;  %v422_v35 = vadd.f32 %v1068_v27, %v1019_v1 }
  0x14   : > { %434 = vst [vmem:[%s1610_s5 + $0x30] sm:$0xff] %v418_v23  ;;  %435 = vst [vmem:[%s1610_s5 + $0x38] sm:$0xff] %v419_v24  ;;  %v423_v36 = vadd.f32 %v1069_v28, %v1019_v1  ;;  %v424_v37 = vadd.f32 %v1072_v29, %v1019_v1  ;;  %v425_v38 = vadd.f32 %v1073_v30, %v1019_v1 }
  0x15   : > { %v426_v39 = vadd.f32 %v1076_v31, %v1019_v1  ;;  %v427_v40 = vadd.f32 %v1077_v32, %v1019_v1  ;;  %436 = vst [vmem:[%s1610_s5 + $0x40] sm:$0xff] %v420_v33  ;;  %437 = vst [vmem:[%s1610_s5 + $0x48] sm:$0xff] %v421_v34 }
  0x16   : > { %438 = vst [vmem:[%s1610_s5 + $0x50] sm:$0xff] %v422_v35  ;;  %439 = vst [vmem:[%s1610_s5 + $0x58] sm:$0xff] %v423_v36 }
  0x17   : > { %440 = vst [vmem:[%s1610_s5 + $0x60] sm:$0xff] %v424_v37  ;;  %441 = vst [vmem:[%s1610_s5 + $0x68] sm:$0xff] %v425_v38 }
  0x18   : > { %442 = vst [vmem:[%s1610_s5 + $0x70] sm:$0xff] %v426_v39  ;;  %443 = vst [vmem:[%s1610_s5 + $0x78] sm:$0xff] %v427_v40 }
  0x19 PF: > { %v1176_v41 = vld [vmem:[%s1278_s30 + $0x38] sm:$0xff]   ;;  %v1177_v42 = vld [vmem:[%s1278_s30 + $0x30] sm:$0xff]   ;;  %v1216_v43 = vmov 0   ;;  %v1178_v44 = vld [vmem:[%s1278_s30 + $0x28] sm:$0xff]   ;;  %p829_p6 = scmp.eq.s32.totalorder %s1206_s18, 2 }
  0x1a   : > { %1175 = vset.pattern.permute.xlu1 %v1216_v43  ;;  %1174 = vset.pattern.permute.xlu0 %v1216_v43  ;;  %v1179_v45 = vld [vmem:[%s1278_s30 + $0x20] sm:$0xff]   ;;  %v1180_v48 = vld [vmem:[%s1278_s30 + $0x18] sm:$0xff]   ;;  %v1181_v49 = vld [vmem:[%s1278_s30 + $0x10] sm:$0xff]  }
  0x1b   : > { %1101 = vmatprep.subr.bf16.mxu0 %v1176_v41  ;;  %1133 = vmatprep.subr.bf16.mxu1 %v1176_v41  ;;  %v1184_v46 = vld [vmem:[%s1273_s27] sm:$0xff]   ;;  %v687_v50 = vld [vmem:[%s1283_s8 + $0x10] sm:$0xff]  ;;  %v688_v52 = vld [vmem:[%s1283_s8 + $0x18] sm:$0xff] }
  0x1c   : > { %1102 = vmatpush3.bf16.msra.mxu0 %v1176_v41  ;;  %1141 = vmatpush3.bf16.msra.mxu1 %v1176_v41  ;;  %v1185_v47 = vld [vmem:[%s1273_s27 + $0x20] sm:$0xff]   ;;  %v686_v53 = vld [vmem:[%s1283_s8 + $0x8] sm:$0xff]  ;;  %v692_v58 = vld [vmem:[%s1283_s8 + $0x38] sm:$0xff] }
  0x1d   : > { %1103 = vmatprep.subr.bf16.mxu0 %v1177_v42  ;;  %1134 = vmatprep.subr.bf16.mxu1 %v1177_v42  ;;  %v685_v51 = vld [vmem:[%s1283_s8] sm:$0xff]  ;;  %v1182_v54 = vld [vmem:[%s1278_s30 + $0x8] sm:$0xff]   ;;  %v691_v59 = vld [vmem:[%s1283_s8 + $0x30] sm:$0xff] }
  0x1e   : > { %1117 = vmatprep.mubr.bf16.mxu0 %v1184_v46  ;;  %1125 = vmatprep.mubr.bf16.mxu1 %v1185_v47  ;;  %v690_v55 = vld [vmem:[%s1283_s8 + $0x28] sm:$0xff]  ;;  %v689_v56 = vld [vmem:[%s1283_s8 + $0x20] sm:$0xff]  ;;  %v1188_v0 = vld [vmem:[%s1273_s27 + $0x10] sm:$0xff]  }
  0x1f   : > { %713 = vperm.xlu1 %1175, %v687_v50   ;;  %703 = vperm.xlu0 %1174, %v685_v51   ;;  %v1183_v57 = vld [vmem:[%s1278_s30] sm:$0xff]   ;;  %v1186_v60 = vld [vmem:[%s1273_s27 + $0x8] sm:$0xff]   ;;  %v1189_v1 = vld [vmem:[%s1273_s27 + $0x30] sm:$0xff]  }
  0x20   : > { %1104 = vmatpush3.bf16.msra.mxu0 %v1177_v42  ;;  %1142 = vmatpush3.bf16.msra.mxu1 %v1177_v42  ;;  %v1187_v61 = vld [vmem:[%s1273_s27 + $0x28] sm:$0xff]   ;;  %v693_v63 = vld [vmem:[%s1283_s8 + $0x40] sm:$0xff]  ;;  %v696_v2 = vld [vmem:[%s1283_s8 + $0x58] sm:$0xff] }
  0x21   : > { %1105 = vmatprep.subr.bf16.mxu0 %v1178_v44  ;;  %1135 = vmatprep.subr.bf16.mxu1 %v1178_v44  ;;  %v694_v62 = vld [vmem:[%s1283_s8 + $0x48] sm:$0xff]  ;;  %v695_v3 = vld [vmem:[%s1283_s8 + $0x50] sm:$0xff]  ;;  %v1190_v4 = vld [vmem:[%s1273_s27 + $0x18] sm:$0xff]  }
  0x22   : > { %v1191_v5 = vld [vmem:[%s1273_s27 + $0x38] sm:$0xff]   ;;  %v698_v6 = vld [vmem:[%s1283_s8 + $0x68] sm:$0xff]  ;;  %v697_v7 = vld [vmem:[%s1283_s8 + $0x60] sm:$0xff] }
  0x23   : > { %718 = vperm.xlu1 %1175, %v688_v52   ;;  %708 = vperm.xlu0 %1174, %v686_v53   ;;  %v700_v8 = vld [vmem:[%s1283_s8 + $0x78] sm:$0xff]  ;;  %v699_v9 = vld [vmem:[%s1283_s8 + $0x70] sm:$0xff]  ;;  %v669_v30 = vld [vmem:[%s1610_s5] sm:$0xff] }
  0x24   : > { %1106 = vmatpush3.bf16.msra.mxu0 %v1178_v44  ;;  %1143 = vmatpush3.bf16.msra.mxu1 %v1178_v44  ;;  %v671_v23 = vld [vmem:[%s1610_s5 + $0x10] sm:$0xff]  ;;  %v677_v32 = vld [vmem:[%s1610_s5 + $0x40] sm:$0xff]  ;;  %v672_v38 = vld [vmem:[%s1610_s5 + $0x18] sm:$0xff] }
  0x25   : > { %1107 = vmatprep.subr.bf16.mxu0 %v1179_v45  ;;  %1136 = vmatprep.subr.bf16.mxu1 %v1179_v45  ;;  %v679_v25 = vld [vmem:[%s1610_s5 + $0x50] sm:$0xff]  ;;  %v680_v40 = vld [vmem:[%s1610_s5 + $0x58] sm:$0xff]  ;;  %v670_v47 = vld [vmem:[%s1610_s5 + $0x8] sm:$0xff] }
  0x27   : > { %728 = vperm.xlu1 %1175, %v690_v55   ;;  %723 = vperm.xlu0 %1174, %v689_v56   ;;  %v675_v56 = vld [vmem:[%s1610_s5 + $0x30] sm:$0xff] }
  0x28   : > { %1108 = vmatpush3.bf16.msra.mxu0 %v1179_v45  ;;  %1144 = vmatpush3.bf16.msra.mxu1 %v1179_v45 }
  0x29   : > { %1109 = vmatprep.subr.bf16.mxu0 %v1180_v48  ;;  %1137 = vmatprep.subr.bf16.mxu1 %v1180_v48 }
  0x2b   : > { %738 = vperm.xlu1 %1175, %v692_v58   ;;  %733 = vperm.xlu0 %1174, %v691_v59   ;;  %v683_v58 = vld [vmem:[%s1610_s5 + $0x70] sm:$0xff] }
  0x2c   : > { %1110 = vmatpush3.bf16.msra.mxu0 %v1180_v48  ;;  %1145 = vmatpush3.bf16.msra.mxu1 %v1180_v48 }
  0x2d   : > { %1111 = vmatprep.subr.bf16.mxu0 %v1181_v49  ;;  %1138 = vmatprep.subr.bf16.mxu1 %v1181_v49 }
  0x2f   : > { %748 = vperm.xlu1 %1175, %v694_v62   ;;  %743 = vperm.xlu0 %1174, %v693_v63  }
  0x30   : > { %1112 = vmatpush3.bf16.msra.mxu0 %v1181_v49  ;;  %1146 = vmatpush3.bf16.msra.mxu1 %v1181_v49  ;;  %v678_v49 = vld [vmem:[%s1610_s5 + $0x48] sm:$0xff] }
  0x31   : > { %1113 = vmatprep.subr.bf16.mxu0 %v1182_v54  ;;  %1139 = vmatprep.subr.bf16.mxu1 %v1182_v54 }
  0x33   : > { %758 = vperm.xlu1 %1175, %v696_v2   ;;  %753 = vperm.xlu0 %1174, %v695_v3   ;;  %v681_v2 = vld [vmem:[%s1610_s5 + $0x60] sm:$0xff] }
  0x34   : > { %1114 = vmatpush3.bf16.msra.mxu0 %v1182_v54  ;;  %1147 = vmatpush3.bf16.msra.mxu1 %v1182_v54 }
  0x35   : > { %1115 = vmatprep.subr.bf16.mxu0 %v1183_v57  ;;  %1140 = vmatprep.subr.bf16.mxu1 %v1183_v57 }
  0x37   : > { %768 = vperm.xlu1 %1175, %v698_v6   ;;  %763 = vperm.xlu0 %1174, %v697_v7  }
  0x38   : > { %1116 = vmatpush3.bf16.msra.mxu0 %v1183_v57  ;;  %1148 = vmatpush3.bf16.msra.mxu1 %v1183_v57 }
  0x3b   : > { %1118 = vmatmul.mubr.bf16.vlgmr.msra.gmra.mxu0 %v1186_v60  ;;  %1126 = vmatmul.mubr.bf16.vlgmr.msra.gmra.mxu1 %v1187_v61 }
  0x3c   : > { %1121 = vmatprep.mubr.bf16.mxu0 %v1188_v0  ;;  %1129 = vmatprep.mubr.bf16.mxu1 %v1189_v1  ;;  %v673_v0 = vld [vmem:[%s1610_s5 + $0x20] sm:$0xff] }
  0x3d   : > { %778 = vperm.xlu1 %1175, %v700_v8   ;;  %773 = vperm.xlu0 %1174, %v699_v9   ;;  %v676_v9 = vld [vmem:[%s1610_s5 + $0x38] sm:$0xff] }
  0x43   : > { %1122 = vmatmul.mubr.bf16.gmra.mxu0 %v1190_v4  ;;  %1130 = vmatmul.mubr.bf16.gmra.mxu1 %v1191_v5 }
  0x9a   : > { %v704_v10 = vpop.permute.xlu0 %703  ;;  %v714_v11 = vpop.permute.xlu1 %713 }
  0x9e   : > { %v709_v12 = vpop.permute.xlu0 %708  ;;  %v719_v13 = vpop.permute.xlu1 %718 }
  0xa2   : > { %v1393_v14 = vpop.permute.xlu0 %723  ;;  %v1395_v15 = vpop.permute.xlu1 %728 }
  0xa6   : > { %v734_v16 = vpop.permute.xlu0 %733  ;;  %v1397_v17 = vpop.permute.xlu1 %738 }
  0xaa   : > { %v744_v18 = vpop.permute.xlu0 %743  ;;  %v749_v19 = vpop.permute.xlu1 %748 }
  0xae   : > { %v754_v20 = vpop.permute.xlu0 %753  ;;  %v759_v21 = vpop.permute.xlu1 %758 }
  0xb2   : > { %v764_v26 = vpop.permute.xlu0 %763  ;;  %v769_v41 = vpop.permute.xlu1 %768 }
  0xb8   : > { %v774_v50 = vpop.permute.xlu0 %773  ;;  %v779_v3 = vpop.permute.xlu1 %778 }
  0xfb   : > { %v1119_v22 = vpop.f32.mrf.mxu0  ;;  %v1127_v24 = vpop.f32.mrf.mxu1 }
  0xfc   : > { %v783_v27 = vmul.f32 %v1119_v22, %v714_v11  ;;  %v791_v28 = vmul.f32 %v1127_v24, %v754_v20  ;;  %v684_v11 = vld [vmem:[%s1610_s5 + $0x78] sm:$0xff] }
  0xfd   : > { %v606_v29 = vpop.f32.mrf.mxu0  ;;  %v638_v31 = vpop.f32.mrf.mxu1 }
  0xfe   : > { %v799_v33 = vadd.f32 %v783_v27, %v671_v23  ;;  %v807_v34 = vadd.f32 %v791_v28, %v679_v25  ;;  %v781_v35 = vmul.f32 %v704_v10, %v606_v29  ;;  %v789_v36 = vmul.f32 %v744_v18, %v638_v31 }
  0xff   : > { %v1120_v37 = vpop.f32.mrf.mxu0  ;;  %v1128_v39 = vpop.f32.mrf.mxu1 }
 0x100   : > { %815 = vst [vmem:[%s1610_s5 + $0x10] sm:$0xff] %v799_v33  ;;  %823 = vst [vmem:[%s1610_s5 + $0x50] sm:$0xff] %v807_v34  ;;  %v797_v42 = vadd.f32 %v781_v35, %v669_v30  ;;  %v805_v43 = vadd.f32 %v789_v36, %v677_v32  ;;  %v784_v44 = vmul.f32 %v1120_v37, %v719_v13 }
 0x101   : > { %v792_v45 = vmul.f32 %v1128_v39, %v759_v21  ;;  %v609_v46 = vpop.f32.mrf.mxu0  ;;  %v641_v48 = vpop.f32.mrf.mxu1  ;;  %v682_v21 = vld [vmem:[%s1610_s5 + $0x68] sm:$0xff] }
 0x102   : > { %813 = vst [vmem:[%s1610_s5] sm:$0xff] %v797_v42  ;;  %821 = vst [vmem:[%s1610_s5 + $0x40] sm:$0xff] %v805_v43  ;;  %v800_v51 = vadd.f32 %v784_v44, %v672_v38  ;;  %v782_v53 = vmul.f32 %v709_v12, %v609_v46  ;;  %v790_v54 = vmul.f32 %v749_v19, %v641_v48  ;;  %v674_v19 = vld [vmem:[%s1610_s5 + $0x28] sm:$0xff] }
 0x103   : > { %v808_v52 = vadd.f32 %v792_v45, %v680_v40  ;;  %v1123_v55 = vpop.f32.mrf.mxu0  ;;  %v1131_v57 = vpop.f32.mrf.mxu1 }
 0x104   : > { %816 = vst [vmem:[%s1610_s5 + $0x18] sm:$0xff] %v800_v51  ;;  %v798_v59 = vadd.f32 %v782_v53, %v670_v47  ;;  %v806_v60 = vadd.f32 %v790_v54, %v678_v49  ;;  %v787_v61 = vmul.f32 %v1123_v55, %v734_v16  ;;  %v795_v62 = vmul.f32 %v1131_v57, %v774_v50 }
 0x105   : > { %824 = vst [vmem:[%s1610_s5 + $0x58] sm:$0xff] %v808_v52  ;;  %v622_v63 = vpop.f32.mrf.mxu0  ;;  %v654_v1 = vpop.f32.mrf.mxu1 }
 0x106   : > { %814 = vst [vmem:[%s1610_s5 + $0x8] sm:$0xff] %v798_v59  ;;  %822 = vst [vmem:[%s1610_s5 + $0x48] sm:$0xff] %v806_v60  ;;  %v803_v4 = vadd.f32 %v787_v61, %v675_v56  ;;  %v811_v5 = vadd.f32 %v795_v62, %v683_v58  ;;  %v785_v6 = vmul.f32 %v1393_v14, %v622_v63 }
 0x107   : > { %v793_v7 = vmul.f32 %v764_v26, %v654_v1  ;;  %v1124_v8 = vpop.f32.mrf.mxu0  ;;  %v1132_v10 = vpop.f32.mrf.mxu1  ;;  %v836_v28 = vld [vmem:[%s1610_s5 + $0x10] sm:$0xff] (%p829_p6) }
 0x108   : > { %819 = vst [vmem:[%s1610_s5 + $0x30] sm:$0xff] %v803_v4  ;;  %827 = vst [vmem:[%s1610_s5 + $0x70] sm:$0xff] %v811_v5  ;;  %v801_v12 = vadd.f32 %v785_v6, %v673_v0  ;;  %v788_v14 = vmul.f32 %v1124_v8, %v1397_v17  ;;  %v796_v16 = vmul.f32 %v1132_v10, %v779_v3  ;;  %v852_v31 = vmax.f32 (%p829_p6), %v836_v28, 0.0  ;;  %v844_v45 = vld [vmem:[%s1610_s5 + $0x50] sm:$0xff] (%p829_p6) }
 0x109   : > { %v809_v13 = vadd.f32 %v793_v7, %v681_v2  ;;  %v625_v18 = vpop.f32.mrf.mxu0  ;;  %v657_v20 = vpop.f32.mrf.mxu1  ;;  %v842_v40 = vld [vmem:[%s1610_s5 + $0x40] sm:$0xff] (%p829_p6)  ;;  %v860_v48 = vmax.f32 (%p829_p6), %v844_v45, 0.0 }
 0x10a   : > { %817 = vst [vmem:[%s1610_s5 + $0x20] sm:$0xff] %v801_v12  ;;  %v804_v17 = vadd.f32 %v788_v14, %v676_v9  ;;  %v812_v22 = vadd.f32 %v796_v16, %v684_v11  ;;  %v786_v23 = vmul.f32 %v1395_v15, %v625_v18  ;;  %v794_v24 = vmul.f32 %v769_v41, %v657_v20  ;;  %833 = sbr.rel (!%p829_p6) target bundleno = 282 (0x11a), region = 48  ;;  %v834_v15 = vld [vmem:[%s1610_s5] sm:$0xff] (%p829_p6) }
 0x10b   : > { %825 = vst [vmem:[%s1610_s5 + $0x60] sm:$0xff] %v809_v13  ;;  %v850_v29 = vmax.f32 (%p829_p6), %v834_v15, 0.0  ;;  %v837_v32 = vld [vmem:[%s1610_s5 + $0x18] sm:$0xff] (%p829_p6)  ;;  %868 = vst [vmem:[%s1610_s5 + $0x10] sm:$0xff] (%p829_p6), %v852_v31  ;;  %v858_v43 = vmax.f32 (%p829_p6), %v842_v40, 0.0 }
 0x10c   : > { %820 = vst [vmem:[%s1610_s5 + $0x38] sm:$0xff] %v804_v17  ;;  %828 = vst [vmem:[%s1610_s5 + $0x78] sm:$0xff] %v812_v22  ;;  %v802_v25 = vadd.f32 %v786_v23, %v674_v19  ;;  %v810_v26 = vadd.f32 %v794_v24, %v682_v21  ;;  %v853_v35 = vmax.f32 (%p829_p6), %v837_v32, 0.0  ;;  %v845_v46 = vld [vmem:[%s1610_s5 + $0x58] sm:$0xff] (%p829_p6) }
 0x10d   : > { %v835_v27 = vld [vmem:[%s1610_s5 + $0x8] sm:$0xff] (%p829_p6)  ;;  %866 = vst [vmem:[%s1610_s5] sm:$0xff] (%p829_p6), %v850_v29  ;;  %v861_v49 = vmax.f32 (%p829_p6), %v845_v46, 0.0  ;;  %874 = vst [vmem:[%s1610_s5 + $0x40] sm:$0xff] (%p829_p6), %v858_v43 }
 0x10e   : > { %818 = vst [vmem:[%s1610_s5 + $0x28] sm:$0xff] %v802_v25  ;;  %826 = vst [vmem:[%s1610_s5 + $0x68] sm:$0xff] %v810_v26  ;;  %v851_v30 = vmax.f32 (%p829_p6), %v835_v27, 0.0  ;;  %v843_v44 = vld [vmem:[%s1610_s5 + $0x48] sm:$0xff] (%p829_p6) }
 0x10f   : > { %v840_v38 = vld [vmem:[%s1610_s5 + $0x30] sm:$0xff]  ;;  %869 = vst [vmem:[%s1610_s5 + $0x18] sm:$0xff] %v853_v35  ;;  %v859_v47 = vmax.f32 %v843_v44, 0.0  ;;  %876 = vst [vmem:[%s1610_s5 + $0x50] sm:$0xff] %v860_v48 }
 0x110   : > { %867 = vst [vmem:[%s1610_s5 + $0x8] sm:$0xff] %v851_v30  ;;  %v856_v41 = vmax.f32 %v840_v38, 0.0  ;;  %v848_v52 = vld [vmem:[%s1610_s5 + $0x70] sm:$0xff]  ;;  %877 = vst [vmem:[%s1610_s5 + $0x58] sm:$0xff] %v861_v49 }
 0x111   : > { %v838_v33 = vld [vmem:[%s1610_s5 + $0x20] sm:$0xff]  ;;  %v864_v55 = vmax.f32 %v848_v52, 0.0  ;;  %875 = vst [vmem:[%s1610_s5 + $0x48] sm:$0xff] %v859_v47 }
 0x112   : > { %v854_v36 = vmax.f32 %v838_v33, 0.0  ;;  %v846_v50 = vld [vmem:[%s1610_s5 + $0x60] sm:$0xff]  ;;  %872 = vst [vmem:[%s1610_s5 + $0x30] sm:$0xff] %v856_v41 }
 0x113   : > { %v841_v39 = vld [vmem:[%s1610_s5 + $0x38] sm:$0xff]  ;;  %v862_v53 = vmax.f32 %v846_v50, 0.0  ;;  %880 = vst [vmem:[%s1610_s5 + $0x70] sm:$0xff] %v864_v55 }
 0x114   : > { %v857_v42 = vmax.f32 %v841_v39, 0.0  ;;  %870 = vst [vmem:[%s1610_s5 + $0x20] sm:$0xff] %v854_v36  ;;  %v849_v56 = vld [vmem:[%s1610_s5 + $0x78] sm:$0xff] }
 0x115   : > { %v839_v34 = vld [vmem:[%s1610_s5 + $0x28] sm:$0xff]  ;;  %v865_v57 = vmax.f32 %v849_v56, 0.0  ;;  %878 = vst [vmem:[%s1610_s5 + $0x60] sm:$0xff] %v862_v53 }
 0x116   : > { %v855_v37 = vmax.f32 %v839_v34, 0.0  ;;  %v847_v51 = vld [vmem:[%s1610_s5 + $0x68] sm:$0xff]  ;;  %873 = vst [vmem:[%s1610_s5 + $0x38] sm:$0xff] %v857_v42 }
 0x117   : > { %v863_v54 = vmax.f32 %v847_v51, 0.0  ;;  %881 = vst [vmem:[%s1610_s5 + $0x78] sm:$0xff] %v865_v57 }
 0x118   : > { %871 = vst [vmem:[%s1610_s5 + $0x28] sm:$0xff] %v855_v37 }
 0x119   : > { %879 = vst [vmem:[%s1610_s5 + $0x68] sm:$0xff] %v863_v54 }
 0x11a PF: > { %s15_s20 = sadd.s32 1, %s1214_s20   ;;  %s1611_s18 = smov %s1210_s19 }
 0x11b   : > { %p12_p7 = scmp.ge.s32.totalorder %s15_s20, 5   ;;  %s1612_s19 = smov %s1614_s21 }
 0x11d   :  { %14 = sbr.rel (!%p12_p7) target bundleno = 2 (0x2), region = 87 }

// kernel: rgcn_forward.7
= control target key start
LH: loop header
LB: loop body
LE: loop exit
PB: predicated region body
PF: predicated region fallthrough
CT: control target
= control target key end

     0   :  { %s1407_s18 = smov 0   ;;  %s1409_s19 = smov 0   ;;  %s1765_s0 = inlined_call_operand.vmem [shape: bf16[3,128,128], index: 0, kind: input, shape index: {}]   ;;  %s1766_s1 = inlined_call_operand.vmem [shape: bf16[3,128,128], index: 1, kind: input, shape index: {}]   ;;  %s1767_s2 = inlined_call_operand.vmem [shape: f32[3,128,1], index: 2, kind: input, shape index: {}]   ;;  %s1768_s3 = inlined_call_operand.vmem [shape: bf16[128,128], index: 3, kind: input, shape index: {}]   ;;  %s1769_s4 = inlined_call_operand.vmem [shape: f32[1,128], index: 4, kind: input, shape index: {}]   ;;  %s1770_s5 = inlined_call_operand.vmem [shape: f32[128,128], index: 5, kind: output, shape index: {}]  }
   0x1   :  { %s1411_s20 = smov 0  }
   0x2 LB: > { %s30_s21 = sadd.s32 1, %s1370_s19  ;;  %p1091_p0 = scmp.ge.s32.totalorder %s1374_s20, 1  ;;  %s1374_s20 = sphi %s1411_s20, %s15_s20   ;;  %s1370_s19 = sphi %s1409_s19, %s1772_s19   ;;  %s1366_s18 = sphi %s1407_s18, %s1771_s18  }
   0x3   : > { %p32_p1 = scmp.ge.s32.totalorder %s30_s21, 3  ;;  %p263_p2 = scmp.lt.s32.totalorder %s1374_s20, 4 }
   0x5   : > { %s1774_s21 = smov (%p32_p1, %s30_s21), 0  ;;  %p264_p3 = pnand %p1091_p0, %p263_p2 }
   0x6   : > { %p322_p4 = scmp.lt.s32.totalorder (!%p264_p3), %s1366_s18, 2  ;;  %p367_p5 = scmp.eq.s32.totalorder (!%p264_p3), %s1366_s18, 0 }
   0x7   : > { %267 = sbr.rel (%p264_p3) target bundleno = 321 (0x141), region = 40 }
   0xc   : > { %s323_s22 = scalar_select %p322_p4, %s1366_s18, 2  ;;  %v1143_v0 = vld [vmem:[%s1768_s3] sm:$0xff] (%p367_p5)   ;;  %v1174_v2 = vld [vmem:[%s1768_s3 + $0x8] sm:$0xff] (%p367_p5)   ;;  %v1175_v7 = vld [vmem:[%s1768_s3 + $0x10] sm:$0xff] (%p367_p5)  }
   0xd   : > { %372 = sbr.rel (!%p367_p5) target bundleno = 25 (0x19), region = 44  ;;  %v1099_v1 = vld [vmem:[%s1769_s4] ss:$0 sm:$0xff] (%p367_p5)  ;;  %v1144_v3 = vunpack.c.l.bf16 (%p367_p5), %v1143_v0  ;;  %v1145_v4 = vunpack.c.h.bf16 (%p367_p5), %v1143_v0  ;;  %v1148_v5 = vunpack.c.l.bf16 (%p367_p5), %v1174_v2  ;;  %v1149_v6 = vunpack.c.h.bf16 (%p367_p5), %v1174_v2  ;;  %v1176_v8 = vld [vmem:[%s1768_s3 + $0x18] sm:$0xff] (%p367_p5)   ;;  %v1178_v14 = vld [vmem:[%s1768_s3 + $0x28] sm:$0xff] (%p367_p5)  }
   0xe   : > { %s1137_s23 = sshll.u32 %s323_s22, 6  ;;  %s1139_s24 = sshll.u32 %s323_s22, 7  ;;  %v1152_v9 = vunpack.c.l.bf16 (%p367_p5), %v1175_v7  ;;  %v1153_v10 = vunpack.c.h.bf16 (%p367_p5), %v1175_v7  ;;  %v1156_v11 = vunpack.c.l.bf16 (%p367_p5), %v1176_v8  ;;  %v1157_v12 = vunpack.c.h.bf16 (%p367_p5), %v1176_v8  ;;  %v1177_v13 = vld [vmem:[%s1768_s3 + $0x20] sm:$0xff] (%p367_p5)   ;;  %v1179_v19 = vld [vmem:[%s1768_s3 + $0x30] sm:$0xff] (%p367_p5)   ;;  %v1180_v20 = vld [vmem:[%s1768_s3 + $0x38] sm:$0xff] (%p367_p5)  }
   0xf   : > { %s1433_s27 = scalar_lea.vmem %s1765_s0, %s1137_s23  ;;  %s1438_s30 = scalar_lea.vmem %s1766_s1, %s1137_s23  ;;  %v412_v15 = vadd.f32 (%p367_p5), %v1144_v3, %v1099_v1  ;;  %v413_v16 = vadd.f32 (%p367_p5), %v1145_v4, %v1099_v1  ;;  %v414_v17 = vadd.f32 (%p367_p5), %v1148_v5, %v1099_v1  ;;  %v415_v18 = vadd.f32 (%p367_p5), %v1149_v6, %v1099_v1 }
  0x10   : > { %s1443_s8 = scalar_lea.vmem %s1767_s2, %s1139_s24  ;;  %v416_v21 = vadd.f32 (%p367_p5), %v1152_v9, %v1099_v1  ;;  %v417_v22 = vadd.f32 (%p367_p5), %v1153_v10, %v1099_v1  ;;  %v418_v23 = vadd.f32 (%p367_p5), %v1156_v11, %v1099_v1  ;;  %v419_v24 = vadd.f32 (%p367_p5), %v1157_v12, %v1099_v1 }
  0x11   : > { %428 = vst [vmem:[%s1770_s5] sm:$0xff] (%p367_p5), %v412_v15  ;;  %429 = vst [vmem:[%s1770_s5 + $0x8] sm:$0xff] (%p367_p5), %v413_v16  ;;  %v1160_v25 = vunpack.c.l.bf16 (%p367_p5), %v1177_v13  ;;  %v1161_v26 = vunpack.c.h.bf16 (%p367_p5), %v1177_v13  ;;  %v1164_v27 = vunpack.c.l.bf16 (%p367_p5), %v1178_v14  ;;  %v1165_v28 = vunpack.c.h.bf16 (%p367_p5), %v1178_v14 }
  0x12   : > { %430 = vst [vmem:[%s1770_s5 + $0x10] sm:$0xff] %v414_v17  ;;  %431 = vst [vmem:[%s1770_s5 + $0x18] sm:$0xff] %v415_v18  ;;  %v1168_v29 = vunpack.c.l.bf16 %v1179_v19  ;;  %v1169_v30 = vunpack.c.h.bf16 %v1179_v19  ;;  %v1172_v31 = vunpack.c.l.bf16 %v1180_v20  ;;  %v1173_v32 = vunpack.c.h.bf16 %v1180_v20 }
  0x13   : > { %432 = vst [vmem:[%s1770_s5 + $0x20] sm:$0xff] %v416_v21  ;;  %433 = vst [vmem:[%s1770_s5 + $0x28] sm:$0xff] %v417_v22  ;;  %v420_v33 = vadd.f32 %v1160_v25, %v1099_v1  ;;  %v421_v34 = vadd.f32 %v1161_v26, %v1099_v1  ;;  %v422_v35 = vadd.f32 %v1164_v27, %v1099_v1 }
  0x14   : > { %434 = vst [vmem:[%s1770_s5 + $0x30] sm:$0xff] %v418_v23  ;;  %435 = vst [vmem:[%s1770_s5 + $0x38] sm:$0xff] %v419_v24  ;;  %v423_v36 = vadd.f32 %v1165_v28, %v1099_v1  ;;  %v424_v37 = vadd.f32 %v1168_v29, %v1099_v1  ;;  %v425_v38 = vadd.f32 %v1169_v30, %v1099_v1 }
  0x15   : > { %v426_v39 = vadd.f32 %v1172_v31, %v1099_v1  ;;  %v427_v40 = vadd.f32 %v1173_v32, %v1099_v1  ;;  %436 = vst [vmem:[%s1770_s5 + $0x40] sm:$0xff] %v420_v33  ;;  %437 = vst [vmem:[%s1770_s5 + $0x48] sm:$0xff] %v421_v34 }
  0x16   : > { %438 = vst [vmem:[%s1770_s5 + $0x50] sm:$0xff] %v422_v35  ;;  %439 = vst [vmem:[%s1770_s5 + $0x58] sm:$0xff] %v423_v36 }
  0x17   : > { %440 = vst [vmem:[%s1770_s5 + $0x60] sm:$0xff] %v424_v37  ;;  %441 = vst [vmem:[%s1770_s5 + $0x68] sm:$0xff] %v425_v38 }
  0x18   : > { %442 = vst [vmem:[%s1770_s5 + $0x70] sm:$0xff] %v426_v39  ;;  %443 = vst [vmem:[%s1770_s5 + $0x78] sm:$0xff] %v427_v40 }
  0x19 PF: > { %v1272_v41 = vld [vmem:[%s1438_s30 + $0x38] sm:$0xff]   ;;  %v1273_v42 = vld [vmem:[%s1438_s30 + $0x30] sm:$0xff]   ;;  %v1376_v43 = vmov 0   ;;  %v1274_v44 = vld [vmem:[%s1438_s30 + $0x28] sm:$0xff]   ;;  %p829_p6 = scmp.eq.s32.totalorder %s1366_s18, 2 }
  0x1a   : > { %1271 = vset.pattern.permute.xlu1 %v1376_v43  ;;  %1270 = vset.pattern.permute.xlu0 %v1376_v43  ;;  %v1275_v45 = vld [vmem:[%s1438_s30 + $0x20] sm:$0xff]   ;;  %v1276_v48 = vld [vmem:[%s1438_s30 + $0x18] sm:$0xff]   ;;  %v1277_v49 = vld [vmem:[%s1438_s30 + $0x10] sm:$0xff]  }
  0x1b   : > { %1197 = vmatprep.subr.bf16.mxu0 %v1272_v41  ;;  %1229 = vmatprep.subr.bf16.mxu1 %v1272_v41  ;;  %v1280_v46 = vld [vmem:[%s1433_s27] sm:$0xff]   ;;  %v687_v50 = vld [vmem:[%s1443_s8 + $0x10] sm:$0xff]  ;;  %v688_v52 = vld [vmem:[%s1443_s8 + $0x18] sm:$0xff] }
  0x1c   : > { %1198 = vmatpush3.bf16.msra.mxu0 %v1272_v41  ;;  %1237 = vmatpush3.bf16.msra.mxu1 %v1272_v41  ;;  %v1281_v47 = vld [vmem:[%s1433_s27 + $0x20] sm:$0xff]   ;;  %v686_v53 = vld [vmem:[%s1443_s8 + $0x8] sm:$0xff]  ;;  %v692_v58 = vld [vmem:[%s1443_s8 + $0x38] sm:$0xff] }
  0x1d   : > { %1199 = vmatprep.subr.bf16.mxu0 %v1273_v42  ;;  %1230 = vmatprep.subr.bf16.mxu1 %v1273_v42  ;;  %v685_v51 = vld [vmem:[%s1443_s8] sm:$0xff]  ;;  %v1278_v54 = vld [vmem:[%s1438_s30 + $0x8] sm:$0xff]   ;;  %v691_v59 = vld [vmem:[%s1443_s8 + $0x30] sm:$0xff] }
  0x1e   : > { %1213 = vmatprep.mubr.bf16.mxu0 %v1280_v46  ;;  %1221 = vmatprep.mubr.bf16.mxu1 %v1281_v47  ;;  %v690_v55 = vld [vmem:[%s1443_s8 + $0x28] sm:$0xff]  ;;  %v689_v56 = vld [vmem:[%s1443_s8 + $0x20] sm:$0xff]  ;;  %v1284_v0 = vld [vmem:[%s1433_s27 + $0x10] sm:$0xff]  }
  0x1f   : > { %713 = vperm.xlu1 %1271, %v687_v50   ;;  %703 = vperm.xlu0 %1270, %v685_v51   ;;  %v1279_v57 = vld [vmem:[%s1438_s30] sm:$0xff]   ;;  %v1282_v60 = vld [vmem:[%s1433_s27 + $0x8] sm:$0xff]   ;;  %v1285_v1 = vld [vmem:[%s1433_s27 + $0x30] sm:$0xff]  }
  0x20   : > { %1200 = vmatpush3.bf16.msra.mxu0 %v1273_v42  ;;  %1238 = vmatpush3.bf16.msra.mxu1 %v1273_v42  ;;  %v1283_v61 = vld [vmem:[%s1433_s27 + $0x28] sm:$0xff]   ;;  %v693_v63 = vld [vmem:[%s1443_s8 + $0x40] sm:$0xff]  ;;  %v696_v2 = vld [vmem:[%s1443_s8 + $0x58] sm:$0xff] }
  0x21   : > { %1201 = vmatprep.subr.bf16.mxu0 %v1274_v44  ;;  %1231 = vmatprep.subr.bf16.mxu1 %v1274_v44  ;;  %v694_v62 = vld [vmem:[%s1443_s8 + $0x48] sm:$0xff]  ;;  %v695_v3 = vld [vmem:[%s1443_s8 + $0x50] sm:$0xff]  ;;  %v1286_v4 = vld [vmem:[%s1433_s27 + $0x18] sm:$0xff]  }
  0x22   : > { %v1287_v5 = vld [vmem:[%s1433_s27 + $0x38] sm:$0xff]   ;;  %v698_v6 = vld [vmem:[%s1443_s8 + $0x68] sm:$0xff]  ;;  %v697_v7 = vld [vmem:[%s1443_s8 + $0x60] sm:$0xff] }
  0x23   : > { %718 = vperm.xlu1 %1271, %v688_v52   ;;  %708 = vperm.xlu0 %1270, %v686_v53   ;;  %v700_v8 = vld [vmem:[%s1443_s8 + $0x78] sm:$0xff]  ;;  %v699_v9 = vld [vmem:[%s1443_s8 + $0x70] sm:$0xff]  ;;  %v669_v30 = vld [vmem:[%s1770_s5] sm:$0xff] }
  0x24   : > { %1202 = vmatpush3.bf16.msra.mxu0 %v1274_v44  ;;  %1239 = vmatpush3.bf16.msra.mxu1 %v1274_v44  ;;  %v671_v23 = vld [vmem:[%s1770_s5 + $0x10] sm:$0xff]  ;;  %v677_v32 = vld [vmem:[%s1770_s5 + $0x40] sm:$0xff]  ;;  %v672_v38 = vld [vmem:[%s1770_s5 + $0x18] sm:$0xff] }
  0x25   : > { %1203 = vmatprep.subr.bf16.mxu0 %v1275_v45  ;;  %1232 = vmatprep.subr.bf16.mxu1 %v1275_v45  ;;  %v679_v25 = vld [vmem:[%s1770_s5 + $0x50] sm:$0xff]  ;;  %v680_v40 = vld [vmem:[%s1770_s5 + $0x58] sm:$0xff]  ;;  %v670_v47 = vld [vmem:[%s1770_s5 + $0x8] sm:$0xff] }
  0x27   : > { %728 = vperm.xlu1 %1271, %v690_v55   ;;  %723 = vperm.xlu0 %1270, %v689_v56   ;;  %v675_v56 = vld [vmem:[%s1770_s5 + $0x30] sm:$0xff] }
  0x28   : > { %1204 = vmatpush3.bf16.msra.mxu0 %v1275_v45  ;;  %1240 = vmatpush3.bf16.msra.mxu1 %v1275_v45 }
  0x29   : > { %1205 = vmatprep.subr.bf16.mxu0 %v1276_v48  ;;  %1233 = vmatprep.subr.bf16.mxu1 %v1276_v48 }
  0x2b   : > { %738 = vperm.xlu1 %1271, %v692_v58   ;;  %733 = vperm.xlu0 %1270, %v691_v59   ;;  %v683_v58 = vld [vmem:[%s1770_s5 + $0x70] sm:$0xff] }
  0x2c   : > { %1206 = vmatpush3.bf16.msra.mxu0 %v1276_v48  ;;  %1241 = vmatpush3.bf16.msra.mxu1 %v1276_v48 }
  0x2d   : > { %1207 = vmatprep.subr.bf16.mxu0 %v1277_v49  ;;  %1234 = vmatprep.subr.bf16.mxu1 %v1277_v49 }
  0x2f   : > { %748 = vperm.xlu1 %1271, %v694_v62   ;;  %743 = vperm.xlu0 %1270, %v693_v63  }
  0x30   : > { %1208 = vmatpush3.bf16.msra.mxu0 %v1277_v49  ;;  %1242 = vmatpush3.bf16.msra.mxu1 %v1277_v49  ;;  %v678_v49 = vld [vmem:[%s1770_s5 + $0x48] sm:$0xff] }
  0x31   : > { %1209 = vmatprep.subr.bf16.mxu0 %v1278_v54  ;;  %1235 = vmatprep.subr.bf16.mxu1 %v1278_v54 }
  0x33   : > { %758 = vperm.xlu1 %1271, %v696_v2   ;;  %753 = vperm.xlu0 %1270, %v695_v3   ;;  %v681_v2 = vld [vmem:[%s1770_s5 + $0x60] sm:$0xff] }
  0x34   : > { %1210 = vmatpush3.bf16.msra.mxu0 %v1278_v54  ;;  %1243 = vmatpush3.bf16.msra.mxu1 %v1278_v54 }
  0x35   : > { %1211 = vmatprep.subr.bf16.mxu0 %v1279_v57  ;;  %1236 = vmatprep.subr.bf16.mxu1 %v1279_v57 }
  0x37   : > { %768 = vperm.xlu1 %1271, %v698_v6   ;;  %763 = vperm.xlu0 %1270, %v697_v7  }
  0x38   : > { %1212 = vmatpush3.bf16.msra.mxu0 %v1279_v57  ;;  %1244 = vmatpush3.bf16.msra.mxu1 %v1279_v57 }
  0x3b   : > { %1214 = vmatmul.mubr.bf16.vlgmr.msra.gmra.mxu0 %v1282_v60  ;;  %1222 = vmatmul.mubr.bf16.vlgmr.msra.gmra.mxu1 %v1283_v61 }
  0x3c   : > { %1217 = vmatprep.mubr.bf16.mxu0 %v1284_v0  ;;  %1225 = vmatprep.mubr.bf16.mxu1 %v1285_v1  ;;  %v673_v0 = vld [vmem:[%s1770_s5 + $0x20] sm:$0xff] }
  0x3d   : > { %778 = vperm.xlu1 %1271, %v700_v8   ;;  %773 = vperm.xlu0 %1270, %v699_v9   ;;  %v676_v9 = vld [vmem:[%s1770_s5 + $0x38] sm:$0xff] }
  0x43   : > { %1218 = vmatmul.mubr.bf16.gmra.mxu0 %v1286_v4  ;;  %1226 = vmatmul.mubr.bf16.gmra.mxu1 %v1287_v5 }
  0x9a   : > { %v704_v10 = vpop.permute.xlu0 %703  ;;  %v714_v11 = vpop.permute.xlu1 %713 }
  0x9e   : > { %v709_v12 = vpop.permute.xlu0 %708  ;;  %v719_v13 = vpop.permute.xlu1 %718 }
  0xa2   : > { %v1553_v14 = vpop.permute.xlu0 %723  ;;  %v1555_v15 = vpop.permute.xlu1 %728 }
  0xa6   : > { %v734_v16 = vpop.permute.xlu0 %733  ;;  %v1557_v17 = vpop.permute.xlu1 %738 }
  0xaa   : > { %v744_v18 = vpop.permute.xlu0 %743  ;;  %v749_v19 = vpop.permute.xlu1 %748 }
  0xae   : > { %v754_v20 = vpop.permute.xlu0 %753  ;;  %v759_v21 = vpop.permute.xlu1 %758 }
  0xb2   : > { %v764_v26 = vpop.permute.xlu0 %763  ;;  %v769_v41 = vpop.permute.xlu1 %768 }
  0xb8   : > { %v774_v50 = vpop.permute.xlu0 %773  ;;  %v779_v3 = vpop.permute.xlu1 %778 }
  0xfb   : > { %v1215_v22 = vpop.f32.mrf.mxu0  ;;  %v1223_v24 = vpop.f32.mrf.mxu1 }
  0xfc   : > { %v783_v27 = vmul.f32 %v1215_v22, %v714_v11  ;;  %v791_v28 = vmul.f32 %v1223_v24, %v754_v20  ;;  %v684_v11 = vld [vmem:[%s1770_s5 + $0x78] sm:$0xff] }
  0xfd   : > { %v606_v29 = vpop.f32.mrf.mxu0  ;;  %v638_v31 = vpop.f32.mrf.mxu1 }
  0xfe   : > { %v799_v33 = vadd.f32 %v783_v27, %v671_v23  ;;  %v807_v34 = vadd.f32 %v791_v28, %v679_v25  ;;  %v781_v35 = vmul.f32 %v704_v10, %v606_v29  ;;  %v789_v36 = vmul.f32 %v744_v18, %v638_v31 }
  0xff   : > { %v1216_v37 = vpop.f32.mrf.mxu0  ;;  %v1224_v39 = vpop.f32.mrf.mxu1 }
 0x100   : > { %815 = vst [vmem:[%s1770_s5 + $0x10] sm:$0xff] %v799_v33  ;;  %823 = vst [vmem:[%s1770_s5 + $0x50] sm:$0xff] %v807_v34  ;;  %v797_v42 = vadd.f32 %v781_v35, %v669_v30  ;;  %v805_v43 = vadd.f32 %v789_v36, %v677_v32  ;;  %v784_v44 = vmul.f32 %v1216_v37, %v719_v13 }
 0x101   : > { %v792_v45 = vmul.f32 %v1224_v39, %v759_v21  ;;  %v609_v46 = vpop.f32.mrf.mxu0  ;;  %v641_v48 = vpop.f32.mrf.mxu1  ;;  %v682_v21 = vld [vmem:[%s1770_s5 + $0x68] sm:$0xff] }
 0x102   : > { %813 = vst [vmem:[%s1770_s5] sm:$0xff] %v797_v42  ;;  %821 = vst [vmem:[%s1770_s5 + $0x40] sm:$0xff] %v805_v43  ;;  %v800_v51 = vadd.f32 %v784_v44, %v672_v38  ;;  %v782_v53 = vmul.f32 %v709_v12, %v609_v46  ;;  %v790_v54 = vmul.f32 %v749_v19, %v641_v48  ;;  %v674_v19 = vld [vmem:[%s1770_s5 + $0x28] sm:$0xff] }
 0x103   : > { %v808_v52 = vadd.f32 %v792_v45, %v680_v40  ;;  %v1219_v55 = vpop.f32.mrf.mxu0  ;;  %v1227_v57 = vpop.f32.mrf.mxu1 }
 0x104   : > { %816 = vst [vmem:[%s1770_s5 + $0x18] sm:$0xff] %v800_v51  ;;  %v798_v59 = vadd.f32 %v782_v53, %v670_v47  ;;  %v806_v60 = vadd.f32 %v790_v54, %v678_v49  ;;  %v787_v61 = vmul.f32 %v1219_v55, %v734_v16  ;;  %v795_v62 = vmul.f32 %v1227_v57, %v774_v50 }
 0x105   : > { %824 = vst [vmem:[%s1770_s5 + $0x58] sm:$0xff] %v808_v52  ;;  %v622_v63 = vpop.f32.mrf.mxu0  ;;  %v654_v1 = vpop.f32.mrf.mxu1 }
 0x106   : > { %814 = vst [vmem:[%s1770_s5 + $0x8] sm:$0xff] %v798_v59  ;;  %822 = vst [vmem:[%s1770_s5 + $0x48] sm:$0xff] %v806_v60  ;;  %v803_v4 = vadd.f32 %v787_v61, %v675_v56  ;;  %v811_v5 = vadd.f32 %v795_v62, %v683_v58  ;;  %v785_v6 = vmul.f32 %v1553_v14, %v622_v63 }
 0x107   : > { %v793_v7 = vmul.f32 %v764_v26, %v654_v1  ;;  %v1220_v8 = vpop.f32.mrf.mxu0  ;;  %v1228_v10 = vpop.f32.mrf.mxu1  ;;  %v836_v28 = vld [vmem:[%s1770_s5 + $0x10] sm:$0xff] (%p829_p6) }
 0x108   : > { %819 = vst [vmem:[%s1770_s5 + $0x30] sm:$0xff] %v803_v4  ;;  %827 = vst [vmem:[%s1770_s5 + $0x70] sm:$0xff] %v811_v5  ;;  %v801_v12 = vadd.f32 %v785_v6, %v673_v0  ;;  %v788_v14 = vmul.f32 %v1220_v8, %v1557_v17  ;;  %v796_v16 = vmul.f32 %v1228_v10, %v779_v3  ;;  %v1119_v31 = vmul.f32 (%p829_p6), -1.442695, %v836_v28  ;;  %v844_v44 = vld [vmem:[%s1770_s5 + $0x50] sm:$0xff] (%p829_p6) }
 0x109   : > { %v809_v13 = vadd.f32 %v793_v7, %v681_v2  ;;  %v625_v18 = vpop.f32.mrf.mxu0  ;;  %v657_v20 = vpop.f32.mrf.mxu1  ;;  %v842_v40 = vld [vmem:[%s1770_s5 + $0x40] sm:$0xff] (%p829_p6)  ;;  %v1127_v49 = vmul.f32 (%p829_p6), -1.442695, %v844_v44 }
 0x10a   : > { %817 = vst [vmem:[%s1770_s5 + $0x20] sm:$0xff] %v801_v12  ;;  %v804_v17 = vadd.f32 %v788_v14, %v676_v9  ;;  %v812_v22 = vadd.f32 %v796_v16, %v684_v11  ;;  %v786_v23 = vmul.f32 %v1555_v15, %v625_v18  ;;  %v794_v24 = vmul.f32 %v769_v41, %v657_v20  ;;  %833 = sbr.rel (!%p829_p6) target bundleno = 321 (0x141), region = 48  ;;  %v834_v15 = vld [vmem:[%s1770_s5] sm:$0xff] (%p829_p6) }
 0x10b   : > { %825 = vst [vmem:[%s1770_s5 + $0x60] sm:$0xff] %v809_v13  ;;  %v1117_v29 = vmul.f32 (%p829_p6), -1.442695, %v834_v15  ;;  %v837_v32 = vld [vmem:[%s1770_s5 + $0x18] sm:$0xff] (%p829_p6)  ;;  %v1125_v45 = vmul.f32 (%p829_p6), -1.442695, %v842_v40 }
 0x10c   : > { %820 = vst [vmem:[%s1770_s5 + $0x38] sm:$0xff] %v804_v17  ;;  %828 = vst [vmem:[%s1770_s5 + $0x78] sm:$0xff] %v812_v22  ;;  %v802_v25 = vadd.f32 %v786_v23, %v674_v19  ;;  %v810_v26 = vadd.f32 %v794_v24, %v682_v21  ;;  %v1120_v35 = vmul.f32 (%p829_p6), -1.442695, %v837_v32  ;;  %v845_v46 = vld [vmem:[%s1770_s5 + $0x58] sm:$0xff] (%p829_p6) }
 0x10d   : > { %v835_v27 = vld [vmem:[%s1770_s5 + $0x8] sm:$0xff] (%p829_p6)  ;;  %1288 = vpow2.f32 (%p829_p6), %v1117_v29  ;;  %v1128_v51 = vmul.f32 (%p829_p6), -1.442695, %v845_v46 }
 0x10e   : > { %818 = vst [vmem:[%s1770_s5 + $0x28] sm:$0xff] %v802_v25  ;;  %826 = vst [vmem:[%s1770_s5 + $0x68] sm:$0xff] %v810_v26  ;;  %v1118_v30 = vmul.f32 (%p829_p6), -1.442695, %v835_v27  ;;  %v843_v43 = vld [vmem:[%s1770_s5 + $0x48] sm:$0xff] (%p829_p6) }
 0x10f   : > { %v840_v38 = vld [vmem:[%s1770_s5 + $0x30] sm:$0xff]  ;;  %v1126_v47 = vmul.f32 -1.442695, %v843_v43 }
 0x110   : > { %1290 = vpow2.f32 %v1118_v30  ;;  %v1123_v41 = vmul.f32 -1.442695, %v840_v38  ;;  %v848_v52 = vld [vmem:[%s1770_s5 + $0x70] sm:$0xff] }
 0x111   : > { %v838_v33 = vld [vmem:[%s1770_s5 + $0x20] sm:$0xff]  ;;  %1292 = vpow2.f32 %v1119_v31  ;;  %v1131_v56 = vmul.f32 -1.442695, %v848_v52 }
 0x112   : > { %v1121_v36 = vmul.f32 -1.442695, %v838_v33  ;;  %1294 = vpow2.f32 %v1120_v35  ;;  %v846_v48 = vld [vmem:[%s1770_s5 + $0x60] sm:$0xff] }
 0x113   : > { %v841_v39 = vld [vmem:[%s1770_s5 + $0x38] sm:$0xff]  ;;  %v1129_v53 = vmul.f32 -1.442695, %v846_v48 }
 0x114   : > { %v1124_v42 = vmul.f32 -1.442695, %v841_v39  ;;  %1296 = vpow2.f32 %v1121_v36  ;;  %v849_v54 = vld [vmem:[%s1770_s5 + $0x78] sm:$0xff] }
 0x115   : > { %v839_v34 = vld [vmem:[%s1770_s5 + $0x28] sm:$0xff]  ;;  %v1132_v57 = vmul.f32 -1.442695, %v849_v54 }
 0x116   : > { %v1122_v37 = vmul.f32 -1.442695, %v839_v34  ;;  %v847_v50 = vld [vmem:[%s1770_s5 + $0x68] sm:$0xff] }
 0x117   : > { %v1130_v55 = vmul.f32 -1.442695, %v847_v50 }
 0x118   : > { %1298 = vpow2.f32 %v1122_v37 }
 0x119   : > { %1300 = vpow2.f32 %v1123_v41 }
 0x11a   : > { %1302 = vpow2.f32 %v1124_v42  ;;  %v1289_v58 = vpop.eup %1288 }
 0x11b   : > { %1304 = vpow2.f32 %v1125_v45  ;;  %v898_v60 = vadd.f32 1.0, %v1289_v58 }
 0x11c   : > { %1306 = vpow2.f32 %v1126_v47 }
 0x11d   : > { %1308 = vpow2.f32 %v1127_v49  ;;  %v1291_v59 = vpop.eup %1290 }
 0x11e   : > { %1310 = vpow2.f32 %v1128_v51  ;;  %v1293_v61 = vpop.eup %1292  ;;  %v899_v62 = vadd.f32 1.0, %v1291_v59 }
 0x11f   : > { %1312 = vpow2.f32 %v1129_v53  ;;  %v1295_v63 = vpop.eup %1294  ;;  %v900_v0 = vadd.f32 1.0, %v1293_v61 }
 0x120   : > { %1314 = vpow2.f32 %v1130_v55  ;;  %v901_v2 = vadd.f32 1.0, %v1295_v63 }
 0x121   : > { %1316 = vpow2.f32 %v1131_v56  ;;  %v1297_v1 = vpop.eup %1296 }
 0x122   : > { %1318 = vpow2.f32 %v1132_v57  ;;  %v902_v4 = vadd.f32 1.0, %v1297_v1 }
 0x123   : > { %1320 = vrcp.f32 %v898_v60 }
 0x124   : > { %1322 = vrcp.f32 %v899_v62 }
 0x125   : > { %v1299_v3 = vpop.eup %1298  ;;  %1324 = vrcp.f32 %v900_v0 }
 0x126   : > { %v1301_v5 = vpop.eup %1300  ;;  %1326 = vrcp.f32 %v901_v2  ;;  %v903_v6 = vadd.f32 1.0, %v1299_v3 }
 0x127   : > { %v1303_v7 = vpop.eup %1302  ;;  %1328 = vrcp.f32 %v902_v4  ;;  %v904_v8 = vadd.f32 1.0, %v1301_v5 }
 0x128   : > { %v1305_v9 = vpop.eup %1304  ;;  %1330 = vrcp.f32 %v903_v6  ;;  %v905_v10 = vadd.f32 1.0, %v1303_v7 }
 0x129   : > { %v1307_v11 = vpop.eup %1306  ;;  %1332 = vrcp.f32 %v904_v8  ;;  %v906_v12 = vadd.f32 1.0, %v1305_v9 }
 0x12a   : > { %v1309_v13 = vpop.eup %1308  ;;  %1334 = vrcp.f32 %v905_v10  ;;  %v907_v14 = vadd.f32 1.0, %v1307_v11 }
 0x12b   : > { %v1311_v16 = vpop.eup %1310  ;;  %1336 = vrcp.f32 %v906_v12  ;;  %v908_v18 = vadd.f32 1.0, %v1309_v13 }
 0x12c   : > { %v1313_v19 = vpop.eup %1312  ;;  %1338 = vrcp.f32 %v907_v14  ;;  %v909_v20 = vadd.f32 1.0, %v1311_v16 }
 0x12d   : > { %v1315_v21 = vpop.eup %1314  ;;  %1340 = vrcp.f32 %v908_v18  ;;  %v910_v17 = vadd.f32 1.0, %v1313_v19 }
 0x12e   : > { %v1317_v22 = vpop.eup %1316  ;;  %1342 = vrcp.f32 %v909_v20  ;;  %v911_v23 = vadd.f32 1.0, %v1315_v21 }
 0x12f   : > { %v1319_v24 = vpop.eup %1318  ;;  %1344 = vrcp.f32 %v910_v17  ;;  %v912_v25 = vadd.f32 1.0, %v1317_v22 }
 0x130   : > { %v1321_v26 = vpop.eup %1320  ;;  %1346 = vrcp.f32 %v911_v23  ;;  %v913_v15 = vadd.f32 1.0, %v1319_v24 }
 0x131   : > { %v1323_v27 = vpop.eup %1322  ;;  %946 = vst [vmem:[%s1770_s5] sm:$0xff] %v1321_v26  ;;  %1348 = vrcp.f32 %v912_v25 }
 0x132   : > { %v1325_v28 = vpop.eup %1324  ;;  %947 = vst [vmem:[%s1770_s5 + $0x8] sm:$0xff] %v1323_v27  ;;  %1350 = vrcp.f32 %v913_v15 }
 0x133   : > { %v1327_v29 = vpop.eup %1326  ;;  %948 = vst [vmem:[%s1770_s5 + $0x10] sm:$0xff] %v1325_v28 }
 0x134   : > { %v1329_v30 = vpop.eup %1328  ;;  %949 = vst [vmem:[%s1770_s5 + $0x18] sm:$0xff] %v1327_v29 }
 0x135   : > { %v1331_v31 = vpop.eup %1330  ;;  %950 = vst [vmem:[%s1770_s5 + $0x20] sm:$0xff] %v1329_v30 }
 0x136   : > { %v1333_v32 = vpop.eup %1332  ;;  %951 = vst [vmem:[%s1770_s5 + $0x28] sm:$0xff] %v1331_v31 }
 0x137   : > { %v1335_v33 = vpop.eup %1334  ;;  %952 = vst [vmem:[%s1770_s5 + $0x30] sm:$0xff] %v1333_v32 }
 0x138   : > { %v1337_v34 = vpop.eup %1336  ;;  %953 = vst [vmem:[%s1770_s5 + $0x38] sm:$0xff] %v1335_v33 }
 0x139   : > { %v1339_v35 = vpop.eup %1338  ;;  %954 = vst [vmem:[%s1770_s5 + $0x40] sm:$0xff] %v1337_v34 }
 0x13a   : > { %v1341_v36 = vpop.eup %1340  ;;  %955 = vst [vmem:[%s1770_s5 + $0x48] sm:$0xff] %v1339_v35 }
 0x13b   : > { %v1343_v37 = vpop.eup %1342  ;;  %956 = vst [vmem:[%s1770_s5 + $0x50] sm:$0xff] %v1341_v36 }
 0x13c   : > { %v1345_v38 = vpop.eup %1344  ;;  %957 = vst [vmem:[%s1770_s5 + $0x58] sm:$0xff] %v1343_v37 }
 0x13d   : > { %v1347_v39 = vpop.eup %1346  ;;  %958 = vst [vmem:[%s1770_s5 + $0x60] sm:$0xff] %v1345_v38 }
 0x13e   : > { %v1349_v40 = vpop.eup %1348  ;;  %959 = vst [vmem:[%s1770_s5 + $0x68] sm:$0xff] %v1347_v39 }
 0x13f   : > { %v1351_v41 = vpop.eup %1350  ;;  %960 = vst [vmem:[%s1770_s5 + $0x70] sm:$0xff] %v1349_v40 }
 0x140   : > { %961 = vst [vmem:[%s1770_s5 + $0x78] sm:$0xff] %v1351_v41 }
 0x141 PF: > { %s15_s20 = sadd.s32 1, %s1374_s20   ;;  %s1771_s18 = smov %s1370_s19 }
 0x142   : > { %p12_p7 = scmp.ge.s32.totalorder %s15_s20, 5   ;;  %s1772_s19 = smov %s1774_s21 }
 0x144   :  { %14 = sbr.rel (!%p12_p7) target bundleno = 2 (0x2), region = 87 }

</bundles_post_ra>
